<compile_context>
chip_gen: v5e
topology: v5e:2x2
jax: 0.10.0
libtpu: 0.0.40
codegen_flags: <defaults>
</compile_context>

<pallas_src>
import jax
import jax.numpy as jnp
import numpy as np
from jax.experimental import pallas as pl
from jax.experimental.pallas import tpu as pltpu

NUM_HIGH = 3

# Separable Gaussian: outer([1,4,6,4,1],[1,4,6,4,1])/256 == (t/16) x (t/16).
# Only 3 distinct tap values thanks to symmetry.
_T0, _T1, _T2 = 1.0 / 16.0, 4.0 / 16.0, 6.0 / 16.0

# Fuse the ::2,::2 downsample into the blur kernel only for levels at least this
# big (smaller levels would run the MXU selection matmul at 16-64-wide shapes).
_MIN_FUSED_DOWNSAMPLE = 128


def _separable_blur(x):
    """Reflect-pad(2,2,2,2) + depthwise 5x5 Gaussian blur of a (Bc,H,W) f32 value.

    Both 5-tap passes stay in registers: the reflect pad is a value-level concat
    of the 2+2 reflected border rows/columns (no VMEM scratch, no masked stores)
    and the symmetric taps need only 7 VALU ops per pass.
    Requires H >= 3 and W >= 3 (same domain as PyTorch reflect padding).
    """
    Bc, H, W = x.shape

    # Rows (sublane axis): padded = [x2, x1, x0..x{H-1}, x{H-2}, x{H-3}].
    xp = jnp.concatenate(
        [x[:, 2:3, :], x[:, 1:2, :], x, x[:, H - 2:H - 1, :], x[:, H - 3:H - 2, :]],
        axis=1)
    v = (_T0 * (xp[:, 0:H, :] + xp[:, 4:H + 4, :])
         + _T1 * (xp[:, 1:H + 1, :] + xp[:, 3:H + 3, :])
         + _T2 * xp[:, 2:H + 2, :])

    # Columns (lane axis): same reflect + 5-tap on the vertical-pass result.
    vp = jnp.concatenate(
        [v[:, :, 2:3], v[:, :, 1:2], v, v[:, :, W - 2:W - 1], v[:, :, W - 3:W - 2]],
        axis=2)
    out = (_T0 * (vp[:, :, 0:W] + vp[:, :, 4:W + 4])
           + _T1 * (vp[:, :, 1:W + 1] + vp[:, :, 3:W + 3])
           + _T2 * vp[:, :, 2:W + 2])
    return out


def _blur_kernel(x_ref, o_ref):
    o_ref[...] = _separable_blur(x_ref[...].astype(jnp.float32)).astype(o_ref.dtype)


def _blur_down_kernel(x_ref, colsel_ref, o_ref, od_ref):
    out = _separable_blur(x_ref[...].astype(jnp.float32))
    o_ref[...] = out.astype(o_ref.dtype)

    Bc = x_ref.shape[0]
    W = x_ref.shape[2]
    dsH, dsW = od_ref.shape[1], od_ref.shape[2]

    # ::2 rows: native sublane-strided re-read of the block just written above
    # (cheap vld traffic; replaces the old dsH*H*W row-selection matmul).
    even_rows = o_ref[:, pl.ds(0, dsH, stride=2), :].astype(jnp.float32)  # (Bc,dsH,W)

    # ::2 columns: one large-M 0/1 selection matmul on the otherwise-idle MXU
    # (lane-strided gathers are not a native TPU load mode).  Precision.HIGH is
    # numerically safe against a 0/1 operand; do NOT lower to DEFAULT (single
    # pass bf16 would round the downsampled level).
    rows2d = even_rows.reshape(Bc * dsH, W)      # dsH % 8 == 0 -> layout-trivial
    down = jnp.dot(rows2d, colsel_ref[...],
                   preferred_element_type=jnp.float32,
                   precision=jax.lax.Precision.HIGH)
    od_ref[...] = down.reshape(Bc, dsH, dsW).astype(od_ref.dtype)


def _pick_block(B, H, W, itemsize, target_bytes=2 << 20):
    """Slabs per block: the largest divisor of B whose block fits ~target_bytes,
    preferring an even number of grid steps (v7x shares the "parallel" axis
    across 2 TensorCores) when that costs at most a 2x smaller block."""
    per_slab = max(1, H * W * itemsize)
    cap = max(1, target_bytes // per_slab)
    fits = [d for d in range(1, B + 1) if B % d == 0 and d <= cap]
    best = max(fits)
    even_steps = [d for d in fits if (B // d) % 2 == 0]
    if even_steps and 2 * max(even_steps) >= best:
        best = max(even_steps)
    return best


def _vmem_limit_bytes(*block_nbytes):
    # ~2x for double-buffering plus headroom for the in-kernel f32 temporaries.
    est = 3 * sum(block_nbytes)
    return int(min(64 << 20, max(32 << 20, est)))


def _conv_gauss_pallas(img, fuse_downsample):
    """Reflect-pad + depthwise 5x5 Gaussian conv (groups=C); optionally also
    returns the fused ::2,::2 downsample of the result."""
    N, C, H, W = img.shape
    if H < 3 or W < 3:
        raise ValueError("reflect pad=2 needs spatial dims >= 3 (as in PyTorch).")
    B = N * C
    x = img.reshape(B, H, W)
    itemsize = jnp.dtype(img.dtype).itemsize
    Bc = _pick_block(B, H, W, itemsize)
    grid = (B // Bc,)
    blk = Bc * H * W * itemsize

    if fuse_downsample:
        dsH, dsW = H // 2, W // 2
        sel = np.zeros((W, dsW), np.float32)
        sel[2 * np.arange(dsW), np.arange(dsW)] = 1.0   # col_sel[w, j] = (w == 2j)
        col_sel = jnp.asarray(sel)
        dblk = Bc * dsH * dsW * itemsize
        filt, down = pl.pallas_call(
            _blur_down_kernel,
            out_shape=(jax.ShapeDtypeStruct((B, H, W), img.dtype),
                       jax.ShapeDtypeStruct((B, dsH, dsW), img.dtype)),
            grid=grid,
            in_specs=[pl.BlockSpec((Bc, H, W), lambda i: (i, 0, 0)),
                      pl.BlockSpec((W, dsW), lambda i: (0, 0))],   # fetched once, resident
            out_specs=(pl.BlockSpec((Bc, H, W), lambda i: (i, 0, 0)),
                       pl.BlockSpec((Bc, dsH, dsW), lambda i: (i, 0, 0))),
            compiler_params=pltpu.CompilerParams(
                dimension_semantics=("parallel",),
                vmem_limit_bytes=_vmem_limit_bytes(blk, blk, dblk, sel.nbytes)),
        )(x, col_sel)
        return filt.reshape(N, C, H, W), down.reshape(N, C, dsH, dsW)

    filt = pl.pallas_call(
        _blur_kernel,
        out_shape=jax.ShapeDtypeStruct((B, H, W), img.dtype),
        grid=grid,
        in_specs=[pl.BlockSpec((Bc, H, W), lambda i: (i, 0, 0))],
        out_specs=pl.BlockSpec((Bc, H, W), lambda i: (i, 0, 0)),
        compiler_params=pltpu.CompilerParams(
            dimension_semantics=("parallel",),
            vmem_limit_bytes=_vmem_limit_bytes(blk, blk)),
    )(x)
    return filt.reshape(N, C, H, W), None


def gauss_pyramid(img, num_high=NUM_HIGH):
    """Forward pass of Gauss_Pyramid_Conv: returns a list of num_high+1 arrays."""
    current = img
    pyr = []
    for _ in range(num_high):
        _, _, H, W = current.shape
        # Fused path only for big, even levels; H % 16 == 0 keeps dsH a multiple
        # of 8 so the in-kernel (Bc*dsH, W) reshape is layout-trivial.
        fuse = (min(H, W) >= _MIN_FUSED_DOWNSAMPLE and H % 16 == 0 and W % 2 == 0)
        if fuse:
            filtered, down = _conv_gauss_pallas(current, fuse_downsample=True)
        else:
            filtered, _ = _conv_gauss_pallas(current, fuse_downsample=False)
            down = filtered[:, :, ::2, ::2]   # tiny tail levels: XLA strided slice
        pyr.append(filtered)
        current = down
    pyr.append(current)
    return pyr


def _reference_pyramid(img, num_high=NUM_HIGH):
    """Pure-JAX reference matching the PyTorch module (self-test only)."""
    t = jnp.array([1.0, 4.0, 6.0, 4.0, 1.0], dtype=jnp.float32)
    g2d = jnp.outer(t, t) / 256.0
    current = img
    pyr = []
    for _ in range(num_high):
        _, _, H, W = current.shape
        p = jnp.pad(current, ((0, 0), (0, 0), (2, 2), (2, 2)), mode="reflect")
        out = jnp.zeros_like(current)
        for di in range(5):
            for dj in range(5):
                out = out + g2d[di, dj] * p[:, :, di:di + H, dj:dj + W]
        pyr.append(out)
        current = out[:, :, ::2, ::2]
    pyr.append(current)
    return pyr


def _check(pyr, ref, expected_shapes):
    assert [tuple(p.shape) for p in pyr] == expected_shapes, \
        [tuple(p.shape) for p in pyr]
    for got, want in zip(pyr, ref):
        np.testing.assert_allclose(np.asarray(got), np.asarray(want),
                                   rtol=1e-3, atol=1e-3)


if __name__ == "__main__":
    key0, key1 = jax.random.split(jax.random.PRNGKey(0))
    fwd = jax.jit(gauss_pyramid)

    # Small input; channels=3 to match the module's gauss_kernel(channels=3).
    x = jax.random.normal(key0, (2, 3, 16, 16), dtype=jnp.float32)
    pyr = jax.block_until_ready(fwd(x))
    _check(pyr, _reference_pyramid(x),
           [(2, 3, 16, 16), (2, 3, 8, 8), (2, 3, 4, 4), (2, 3, 2, 2)])

    # Slightly larger input so the fused blur+downsample path is exercised too.
    x2 = jax.random.normal(key1, (1, 3, 128, 128), dtype=jnp.float32)
    pyr2 = jax.block_until_ready(fwd(x2))
    _check(pyr2, _reference_pyramid(x2),
           [(1, 3, 128, 128), (1, 3, 64, 64), (1, 3, 32, 32), (1, 3, 16, 16)])

    print("KERNEL_OK")
</pallas_src>

<mosaic_0001>
module attributes {stable_mosaic.version = 11 : i64} {
  func.func @_blur_kernel(%arg0: i32, %arg1: memref<3x16x16xf32, #tpu.memory_space<vmem>>, %arg2: memref<3x16x16xf32, #tpu.memory_space<vmem>>) attributes {dimension_semantics = [#tpu.dimension_semantics<parallel>], iteration_bounds = array<i64: 2>, scalar_prefetch = 0 : i64, scratch_operands = 0 : i64, tpu.core_type = #tpu.core_type<tc>, window_params = [{transform_indices = @transform_0, window_bounds = array<i64: 3, 16, 16>}, {transform_indices = @transform_1, window_bounds = array<i64: 3, 16, 16>}]} {
    %c0 = arith.constant 0 : index
    %c0_0 = arith.constant 0 : index
    %c0_1 = arith.constant 0 : index
    %0 = vector.load %arg1[%c0, %c0_0, %c0_1] : memref<3x16x16xf32, #tpu.memory_space<vmem>>, vector<3x16x16xf32>
    %1 = vector.extract_strided_slice %0 {offsets = [0, 2, 0], sizes = [3, 1, 16], strides = [1, 1, 1]} : vector<3x16x16xf32> to vector<3x1x16xf32>
    %2 = vector.extract_strided_slice %0 {offsets = [0, 1, 0], sizes = [3, 1, 16], strides = [1, 1, 1]} : vector<3x16x16xf32> to vector<3x1x16xf32>
    %3 = vector.extract_strided_slice %0 {offsets = [0, 14, 0], sizes = [3, 1, 16], strides = [1, 1, 1]} : vector<3x16x16xf32> to vector<3x1x16xf32>
    %4 = vector.extract_strided_slice %0 {offsets = [0, 13, 0], sizes = [3, 1, 16], strides = [1, 1, 1]} : vector<3x16x16xf32> to vector<3x1x16xf32>
    %5 = tpu.concatenate %1, %2, %0, %3, %4 in 1 : vector<3x1x16xf32>, vector<3x1x16xf32>, vector<3x16x16xf32>, vector<3x1x16xf32>, vector<3x1x16xf32> -> vector<3x20x16xf32>
    %6 = vector.extract_strided_slice %5 {offsets = [0, 0, 0], sizes = [3, 16, 16], strides = [1, 1, 1]} : vector<3x20x16xf32> to vector<3x16x16xf32>
    %7 = vector.extract_strided_slice %5 {offsets = [0, 4, 0], sizes = [3, 16, 16], strides = [1, 1, 1]} : vector<3x20x16xf32> to vector<3x16x16xf32>
    %8 = arith.addf %6, %7 : vector<3x16x16xf32>
    %cst = arith.constant 6.250000e-02 : f32
    %9 = vector.broadcast %cst : f32 to vector<3x16x16xf32>
    %10 = arith.mulf %9, %8 : vector<3x16x16xf32>
    %11 = vector.extract_strided_slice %5 {offsets = [0, 1, 0], sizes = [3, 16, 16], strides = [1, 1, 1]} : vector<3x20x16xf32> to vector<3x16x16xf32>
    %12 = vector.extract_strided_slice %5 {offsets = [0, 3, 0], sizes = [3, 16, 16], strides = [1, 1, 1]} : vector<3x20x16xf32> to vector<3x16x16xf32>
    %13 = arith.addf %11, %12 : vector<3x16x16xf32>
    %cst_2 = arith.constant 2.500000e-01 : f32
    %14 = vector.broadcast %cst_2 : f32 to vector<3x16x16xf32>
    %15 = arith.mulf %14, %13 : vector<3x16x16xf32>
    %16 = arith.addf %10, %15 : vector<3x16x16xf32>
    %17 = vector.extract_strided_slice %5 {offsets = [0, 2, 0], sizes = [3, 16, 16], strides = [1, 1, 1]} : vector<3x20x16xf32> to vector<3x16x16xf32>
    %cst_3 = arith.constant 3.750000e-01 : f32
    %18 = vector.broadcast %cst_3 : f32 to vector<3x16x16xf32>
    %19 = arith.mulf %18, %17 : vector<3x16x16xf32>
    %20 = arith.addf %16, %19 : vector<3x16x16xf32>
    %21 = vector.extract_strided_slice %20 {offsets = [0, 0, 2], sizes = [3, 16, 1], strides = [1, 1, 1]} : vector<3x16x16xf32> to vector<3x16x1xf32>
    %22 = vector.extract_strided_slice %20 {offsets = [0, 0, 1], sizes = [3, 16, 1], strides = [1, 1, 1]} : vector<3x16x16xf32> to vector<3x16x1xf32>
    %23 = vector.extract_strided_slice %20 {offsets = [0, 0, 14], sizes = [3, 16, 1], strides = [1, 1, 1]} : vector<3x16x16xf32> to vector<3x16x1xf32>
    %24 = vector.extract_strided_slice %20 {offsets = [0, 0, 13], sizes = [3, 16, 1], strides = [1, 1, 1]} : vector<3x16x16xf32> to vector<3x16x1xf32>
    %25 = tpu.concatenate %21, %22, %20, %23, %24 in 2 : vector<3x16x1xf32>, vector<3x16x1xf32>, vector<3x16x16xf32>, vector<3x16x1xf32>, vector<3x16x1xf32> -> vector<3x16x20xf32>
    %26 = vector.extract_strided_slice %25 {offsets = [0, 0, 0], sizes = [3, 16, 16], strides = [1, 1, 1]} : vector<3x16x20xf32> to vector<3x16x16xf32>
    %27 = vector.extract_strided_slice %25 {offsets = [0, 0, 4], sizes = [3, 16, 16], strides = [1, 1, 1]} : vector<3x16x20xf32> to vector<3x16x16xf32>
    %28 = arith.addf %26, %27 : vector<3x16x16xf32>
    %cst_4 = arith.constant 6.250000e-02 : f32
    %29 = vector.broadcast %cst_4 : f32 to vector<3x16x16xf32>
    %30 = arith.mulf %29, %28 : vector<3x16x16xf32>
    %31 = vector.extract_strided_slice %25 {offsets = [0, 0, 1], sizes = [3, 16, 16], strides = [1, 1, 1]} : vector<3x16x20xf32> to vector<3x16x16xf32>
    %32 = vector.extract_strided_slice %25 {offsets = [0, 0, 3], sizes = [3, 16, 16], strides = [1, 1, 1]} : vector<3x16x20xf32> to vector<3x16x16xf32>
    %33 = arith.addf %31, %32 : vector<3x16x16xf32>
    %cst_5 = arith.constant 2.500000e-01 : f32
    %34 = vector.broadcast %cst_5 : f32 to vector<3x16x16xf32>
    %35 = arith.mulf %34, %33 : vector<3x16x16xf32>
    %36 = arith.addf %30, %35 : vector<3x16x16xf32>
    %37 = vector.extract_strided_slice %25 {offsets = [0, 0, 2], sizes = [3, 16, 16], strides = [1, 1, 1]} : vector<3x16x20xf32> to vector<3x16x16xf32>
    %cst_6 = arith.constant 3.750000e-01 : f32
    %38 = vector.broadcast %cst_6 : f32 to vector<3x16x16xf32>
    %39 = arith.mulf %38, %37 : vector<3x16x16xf32>
    %40 = arith.addf %36, %39 : vector<3x16x16xf32>
    %c0_7 = arith.constant 0 : index
    %c0_8 = arith.constant 0 : index
    %c0_9 = arith.constant 0 : index
    %41 = vector.load %arg2[%c0_7, %c0_8, %c0_9] : memref<3x16x16xf32, #tpu.memory_space<vmem>>, vector<3x16x16xf32>
    tpu.vector_store %arg2[%c0_7, %c0_8, %c0_9], %40 {strides = array<i32>} : memref<3x16x16xf32, #tpu.memory_space<vmem>>, vector<3x16x16xf32>,
    return
  }
  func.func @transform_0(%arg0: i32) -> (i32, i32, i32) {
    %c0_i32 = arith.constant 0 : i32
    %c0_i32_0 = arith.constant 0 : i32
    %c0_i32_1 = arith.constant 0 : i32
    return %arg0, %c0_i32, %c0_i32_0 : i32, i32, i32
  }
  func.func @transform_1(%arg0: i32) -> (i32, i32, i32) {
    %c0_i32 = arith.constant 0 : i32
    %c0_i32_0 = arith.constant 0 : i32
    %c0_i32_1 = arith.constant 0 : i32
    return %arg0, %c0_i32, %c0_i32_0 : i32, i32, i32
  }
}

module attributes {stable_mosaic.version = 11 : i64} {
  func.func @_blur_kernel(%arg0: i32, %arg1: memref<3x8x8xf32, #tpu.memory_space<vmem>>, %arg2: memref<3x8x8xf32, #tpu.memory_space<vmem>>) attributes {dimension_semantics = [#tpu.dimension_semantics<parallel>], iteration_bounds = array<i64: 2>, scalar_prefetch = 0 : i64, scratch_operands = 0 : i64, tpu.core_type = #tpu.core_type<tc>, window_params = [{transform_indices = @transform_0, window_bounds = array<i64: 3, 8, 8>}, {transform_indices = @transform_1, window_bounds = array<i64: 3, 8, 8>}]} {
    %c0 = arith.constant 0 : index
    %c0_0 = arith.constant 0 : index
    %c0_1 = arith.constant 0 : index
    %0 = vector.load %arg1[%c0, %c0_0, %c0_1] : memref<3x8x8xf32, #tpu.memory_space<vmem>>, vector<3x8x8xf32>
    %1 = vector.extract_strided_slice %0 {offsets = [0, 2, 0], sizes = [3, 1, 8], strides = [1, 1, 1]} : vector<3x8x8xf32> to vector<3x1x8xf32>
    %2 = vector.extract_strided_slice %0 {offsets = [0, 1, 0], sizes = [3, 1, 8], strides = [1, 1, 1]} : vector<3x8x8xf32> to vector<3x1x8xf32>
    %3 = vector.extract_strided_slice %0 {offsets = [0, 6, 0], sizes = [3, 1, 8], strides = [1, 1, 1]} : vector<3x8x8xf32> to vector<3x1x8xf32>
    %4 = vector.extract_strided_slice %0 {offsets = [0, 5, 0], sizes = [3, 1, 8], strides = [1, 1, 1]} : vector<3x8x8xf32> to vector<3x1x8xf32>
    %5 = tpu.concatenate %1, %2, %0, %3, %4 in 1 : vector<3x1x8xf32>, vector<3x1x8xf32>, vector<3x8x8xf32>, vector<3x1x8xf32>, vector<3x1x8xf32> -> vector<3x12x8xf32>
    %6 = vector.extract_strided_slice %5 {offsets = [0, 0, 0], sizes = [3, 8, 8], strides = [1, 1, 1]} : vector<3x12x8xf32> to vector<3x8x8xf32>
    %7 = vector.extract_strided_slice %5 {offsets = [0, 4, 0], sizes = [3, 8, 8], strides = [1, 1, 1]} : vector<3x12x8xf32> to vector<3x8x8xf32>
    %8 = arith.addf %6, %7 : vector<3x8x8xf32>
    %cst = arith.constant 6.250000e-02 : f32
    %9 = vector.broadcast %cst : f32 to vector<3x8x8xf32>
    %10 = arith.mulf %9, %8 : vector<3x8x8xf32>
    %11 = vector.extract_strided_slice %5 {offsets = [0, 1, 0], sizes = [3, 8, 8], strides = [1, 1, 1]} : vector<3x12x8xf32> to vector<3x8x8xf32>
    %12 = vector.extract_strided_slice %5 {offsets = [0, 3, 0], sizes = [3, 8, 8], strides = [1, 1, 1]} : vector<3x12x8xf32> to vector<3x8x8xf32>
    %13 = arith.addf %11, %12 : vector<3x8x8xf32>
    %cst_2 = arith.constant 2.500000e-01 : f32
    %14 = vector.broadcast %cst_2 : f32 to vector<3x8x8xf32>
    %15 = arith.mulf %14, %13 : vector<3x8x8xf32>
    %16 = arith.addf %10, %15 : vector<3x8x8xf32>
    %17 = vector.extract_strided_slice %5 {offsets = [0, 2, 0], sizes = [3, 8, 8], strides = [1, 1, 1]} : vector<3x12x8xf32> to vector<3x8x8xf32>
    %cst_3 = arith.constant 3.750000e-01 : f32
    %18 = vector.broadcast %cst_3 : f32 to vector<3x8x8xf32>
    %19 = arith.mulf %18, %17 : vector<3x8x8xf32>
    %20 = arith.addf %16, %19 : vector<3x8x8xf32>
    %21 = vector.extract_strided_slice %20 {offsets = [0, 0, 2], sizes = [3, 8, 1], strides = [1, 1, 1]} : vector<3x8x8xf32> to vector<3x8x1xf32>
    %22 = vector.extract_strided_slice %20 {offsets = [0, 0, 1], sizes = [3, 8, 1], strides = [1, 1, 1]} : vector<3x8x8xf32> to vector<3x8x1xf32>
    %23 = vector.extract_strided_slice %20 {offsets = [0, 0, 6], sizes = [3, 8, 1], strides = [1, 1, 1]} : vector<3x8x8xf32> to vector<3x8x1xf32>
    %24 = vector.extract_strided_slice %20 {offsets = [0, 0, 5], sizes = [3, 8, 1], strides = [1, 1, 1]} : vector<3x8x8xf32> to vector<3x8x1xf32>
    %25 = tpu.concatenate %21, %22, %20, %23, %24 in 2 : vector<3x8x1xf32>, vector<3x8x1xf32>, vector<3x8x8xf32>, vector<3x8x1xf32>, vector<3x8x1xf32> -> vector<3x8x12xf32>
    %26 = vector.extract_strided_slice %25 {offsets = [0, 0, 0], sizes = [3, 8, 8], strides = [1, 1, 1]} : vector<3x8x12xf32> to vector<3x8x8xf32>
    %27 = vector.extract_strided_slice %25 {offsets = [0, 0, 4], sizes = [3, 8, 8], strides = [1, 1, 1]} : vector<3x8x12xf32> to vector<3x8x8xf32>
    %28 = arith.addf %26, %27 : vector<3x8x8xf32>
    %cst_4 = arith.constant 6.250000e-02 : f32
    %29 = vector.broadcast %cst_4 : f32 to vector<3x8x8xf32>
    %30 = arith.mulf %29, %28 : vector<3x8x8xf32>
    %31 = vector.extract_strided_slice %25 {offsets = [0, 0, 1], sizes = [3, 8, 8], strides = [1, 1, 1]} : vector<3x8x12xf32> to vector<3x8x8xf32>
    %32 = vector.extract_strided_slice %25 {offsets = [0, 0, 3], sizes = [3, 8, 8], strides = [1, 1, 1]} : vector<3x8x12xf32> to vector<3x8x8xf32>
    %33 = arith.addf %31, %32 : vector<3x8x8xf32>
    %cst_5 = arith.constant 2.500000e-01 : f32
    %34 = vector.broadcast %cst_5 : f32 to vector<3x8x8xf32>
    %35 = arith.mulf %34, %33 : vector<3x8x8xf32>
    %36 = arith.addf %30, %35 : vector<3x8x8xf32>
    %37 = vector.extract_strided_slice %25 {offsets = [0, 0, 2], sizes = [3, 8, 8], strides = [1, 1, 1]} : vector<3x8x12xf32> to vector<3x8x8xf32>
    %cst_6 = arith.constant 3.750000e-01 : f32
    %38 = vector.broadcast %cst_6 : f32 to vector<3x8x8xf32>
    %39 = arith.mulf %38, %37 : vector<3x8x8xf32>
    %40 = arith.addf %36, %39 : vector<3x8x8xf32>
    %c0_7 = arith.constant 0 : index
    %c0_8 = arith.constant 0 : index
    %c0_9 = arith.constant 0 : index
    %41 = vector.load %arg2[%c0_7, %c0_8, %c0_9] : memref<3x8x8xf32, #tpu.memory_space<vmem>>, vector<3x8x8xf32>
    tpu.vector_store %arg2[%c0_7, %c0_8, %c0_9], %40 {strides = array<i32>} : memref<3x8x8xf32, #tpu.memory_space<vmem>>, vector<3x8x8xf32>,
    return
  }
  func.func @transform_0(%arg0: i32) -> (i32, i32, i32) {
    %c0_i32 = arith.constant 0 : i32
    %c0_i32_0 = arith.constant 0 : i32
    %c0_i32_1 = arith.constant 0 : i32
    return %arg0, %c0_i32, %c0_i32_0 : i32, i32, i32
  }
  func.func @transform_1(%arg0: i32) -> (i32, i32, i32) {
    %c0_i32 = arith.constant 0 : i32
    %c0_i32_0 = arith.constant 0 : i32
    %c0_i32_1 = arith.constant 0 : i32
    return %arg0, %c0_i32, %c0_i32_0 : i32, i32, i32
  }
}

module attributes {stable_mosaic.version = 11 : i64} {
  func.func @_blur_kernel(%arg0: i32, %arg1: memref<3x4x4xf32, #tpu.memory_space<vmem>>, %arg2: memref<3x4x4xf32, #tpu.memory_space<vmem>>) attributes {dimension_semantics = [#tpu.dimension_semantics<parallel>], iteration_bounds = array<i64: 2>, scalar_prefetch = 0 : i64, scratch_operands = 0 : i64, tpu.core_type = #tpu.core_type<tc>, window_params = [{transform_indices = @transform_0, window_bounds = array<i64: 3, 4, 4>}, {transform_indices = @transform_1, window_bounds = array<i64: 3, 4, 4>}]} {
    %c0 = arith.constant 0 : index
    %c0_0 = arith.constant 0 : index
    %c0_1 = arith.constant 0 : index
    %0 = vector.load %arg1[%c0, %c0_0, %c0_1] : memref<3x4x4xf32, #tpu.memory_space<vmem>>, vector<3x4x4xf32>
    %1 = vector.extract_strided_slice %0 {offsets = [0, 2, 0], sizes = [3, 1, 4], strides = [1, 1, 1]} : vector<3x4x4xf32> to vector<3x1x4xf32>
    %2 = vector.extract_strided_slice %0 {offsets = [0, 1, 0], sizes = [3, 1, 4], strides = [1, 1, 1]} : vector<3x4x4xf32> to vector<3x1x4xf32>
    %3 = vector.extract_strided_slice %0 {offsets = [0, 2, 0], sizes = [3, 1, 4], strides = [1, 1, 1]} : vector<3x4x4xf32> to vector<3x1x4xf32>
    %4 = vector.extract_strided_slice %0 {offsets = [0, 1, 0], sizes = [3, 1, 4], strides = [1, 1, 1]} : vector<3x4x4xf32> to vector<3x1x4xf32>
    %5 = tpu.concatenate %1, %2, %0, %3, %4 in 1 : vector<3x1x4xf32>, vector<3x1x4xf32>, vector<3x4x4xf32>, vector<3x1x4xf32>, vector<3x1x4xf32> -> vector<3x8x4xf32>
    %6 = vector.extract_strided_slice %5 {offsets = [0, 0, 0], sizes = [3, 4, 4], strides = [1, 1, 1]} : vector<3x8x4xf32> to vector<3x4x4xf32>
    %7 = vector.extract_strided_slice %5 {offsets = [0, 4, 0], sizes = [3, 4, 4], strides = [1, 1, 1]} : vector<3x8x4xf32> to vector<3x4x4xf32>
    %8 = arith.addf %6, %7 : vector<3x4x4xf32>
    %cst = arith.constant 6.250000e-02 : f32
    %9 = vector.broadcast %cst : f32 to vector<3x4x4xf32>
    %10 = arith.mulf %9, %8 : vector<3x4x4xf32>
    %11 = vector.extract_strided_slice %5 {offsets = [0, 1, 0], sizes = [3, 4, 4], strides = [1, 1, 1]} : vector<3x8x4xf32> to vector<3x4x4xf32>
    %12 = vector.extract_strided_slice %5 {offsets = [0, 3, 0], sizes = [3, 4, 4], strides = [1, 1, 1]} : vector<3x8x4xf32> to vector<3x4x4xf32>
    %13 = arith.addf %11, %12 : vector<3x4x4xf32>
    %cst_2 = arith.constant 2.500000e-01 : f32
    %14 = vector.broadcast %cst_2 : f32 to vector<3x4x4xf32>
    %15 = arith.mulf %14, %13 : vector<3x4x4xf32>
    %16 = arith.addf %10, %15 : vector<3x4x4xf32>
    %17 = vector.extract_strided_slice %5 {offsets = [0, 2, 0], sizes = [3, 4, 4], strides = [1, 1, 1]} : vector<3x8x4xf32> to vector<3x4x4xf32>
    %cst_3 = arith.constant 3.750000e-01 : f32
    %18 = vector.broadcast %cst_3 : f32 to vector<3x4x4xf32>
    %19 = arith.mulf %18, %17 : vector<3x4x4xf32>
    %20 = arith.addf %16, %19 : vector<3x4x4xf32>
    %21 = vector.extract_strided_slice %20 {offsets = [0, 0, 2], sizes = [3, 4, 1], strides = [1, 1, 1]} : vector<3x4x4xf32> to vector<3x4x1xf32>
    %22 = vector.extract_strided_slice %20 {offsets = [0, 0, 1], sizes = [3, 4, 1], strides = [1, 1, 1]} : vector<3x4x4xf32> to vector<3x4x1xf32>
    %23 = vector.extract_strided_slice %20 {offsets = [0, 0, 2], sizes = [3, 4, 1], strides = [1, 1, 1]} : vector<3x4x4xf32> to vector<3x4x1xf32>
    %24 = vector.extract_strided_slice %20 {offsets = [0, 0, 1], sizes = [3, 4, 1], strides = [1, 1, 1]} : vector<3x4x4xf32> to vector<3x4x1xf32>
    %25 = tpu.concatenate %21, %22, %20, %23, %24 in 2 : vector<3x4x1xf32>, vector<3x4x1xf32>, vector<3x4x4xf32>, vector<3x4x1xf32>, vector<3x4x1xf32> -> vector<3x4x8xf32>
    %26 = vector.extract_strided_slice %25 {offsets = [0, 0, 0], sizes = [3, 4, 4], strides = [1, 1, 1]} : vector<3x4x8xf32> to vector<3x4x4xf32>
    %27 = vector.extract_strided_slice %25 {offsets = [0, 0, 4], sizes = [3, 4, 4], strides = [1, 1, 1]} : vector<3x4x8xf32> to vector<3x4x4xf32>
    %28 = arith.addf %26, %27 : vector<3x4x4xf32>
    %cst_4 = arith.constant 6.250000e-02 : f32
    %29 = vector.broadcast %cst_4 : f32 to vector<3x4x4xf32>
    %30 = arith.mulf %29, %28 : vector<3x4x4xf32>
    %31 = vector.extract_strided_slice %25 {offsets = [0, 0, 1], sizes = [3, 4, 4], strides = [1, 1, 1]} : vector<3x4x8xf32> to vector<3x4x4xf32>
    %32 = vector.extract_strided_slice %25 {offsets = [0, 0, 3], sizes = [3, 4, 4], strides = [1, 1, 1]} : vector<3x4x8xf32> to vector<3x4x4xf32>
    %33 = arith.addf %31, %32 : vector<3x4x4xf32>
    %cst_5 = arith.constant 2.500000e-01 : f32
    %34 = vector.broadcast %cst_5 : f32 to vector<3x4x4xf32>
    %35 = arith.mulf %34, %33 : vector<3x4x4xf32>
    %36 = arith.addf %30, %35 : vector<3x4x4xf32>
    %37 = vector.extract_strided_slice %25 {offsets = [0, 0, 2], sizes = [3, 4, 4], strides = [1, 1, 1]} : vector<3x4x8xf32> to vector<3x4x4xf32>
    %cst_6 = arith.constant 3.750000e-01 : f32
    %38 = vector.broadcast %cst_6 : f32 to vector<3x4x4xf32>
    %39 = arith.mulf %38, %37 : vector<3x4x4xf32>
    %40 = arith.addf %36, %39 : vector<3x4x4xf32>
    %c0_7 = arith.constant 0 : index
    %c0_8 = arith.constant 0 : index
    %c0_9 = arith.constant 0 : index
    %41 = vector.load %arg2[%c0_7, %c0_8, %c0_9] : memref<3x4x4xf32, #tpu.memory_space<vmem>>, vector<3x4x4xf32>
    tpu.vector_store %arg2[%c0_7, %c0_8, %c0_9], %40 {strides = array<i32>} : memref<3x4x4xf32, #tpu.memory_space<vmem>>, vector<3x4x4xf32>,
    return
  }
  func.func @transform_0(%arg0: i32) -> (i32, i32, i32) {
    %c0_i32 = arith.constant 0 : i32
    %c0_i32_0 = arith.constant 0 : i32
    %c0_i32_1 = arith.constant 0 : i32
    return %arg0, %c0_i32, %c0_i32_0 : i32, i32, i32
  }
  func.func @transform_1(%arg0: i32) -> (i32, i32, i32) {
    %c0_i32 = arith.constant 0 : i32
    %c0_i32_0 = arith.constant 0 : i32
    %c0_i32_1 = arith.constant 0 : i32
    return %arg0, %c0_i32, %c0_i32_0 : i32, i32, i32
  }
}

</mosaic_0001>

<bundles_post_ra>
// kernel: gauss_pyramid.3
= control target key start
LH: loop header
LB: loop body
LE: loop exit
PB: predicated region body
PF: predicated region fallthrough
CT: control target
= control target key end

     0   :  { %6 = vsyncpa [#allocation3], 0  ;;  %s1164_s0 = inlined_call_operand.hbm [shape: f32[6,16,16], index: 0, kind: input, shape index: {}]   ;;  %s1165_s1 = inlined_call_operand.vmem [shape: f32[6,16,16], index: 1, kind: output, shape index: {}]  }
   0x1   :  { %8 = vsyncpa [#allocation3 + $0x1], 0  ;;  %s834_s6 = smov 0   ;;  %s836_s7 = smov 0  }
   0x2   :  { %s838_s8 = smov 0   ;;  %s840_s9 = smov 0  }
   0x3 LB: > { %s686_s10 = sadd.s32 4294967295, %s814_s9   ;;  %s854_s11 = sadd.s32 1, %s814_s9   ;;  %s814_s9 = sphi %s840_s9, %s1171_s9   ;;  %s810_s8 = sphi %s838_s8, %s1170_s8   ;;  %s806_s7 = sphi %s836_s7, %s1169_s7   ;;  %s802_s6 = sphi %s834_s6, %s1168_s6  }
   0x4   : > { %s18_s12 = ssub.s32 %s814_s9, %s854_s11  ;;  %s21_s13 = sadd.s32 1, %s810_s8 }
   0x5   : > { %p19_p0 = scmp.eq.s32.totalorder %s18_s12, 0  ;;  %p28_p1 = scmp.ne.s32.totalorder %s810_s8, %s806_s7 }
   0x6   : > { %p29_p2 = scmp.eq.s32.totalorder %s814_s9, 0  ;;  %p34_p3 = scmp.ne.s32.totalorder %s806_s7, %s802_s6 }
   0x7   : > { %s864_s14 = scalar_select %p19_p0, %s810_s8, %s21_s13  }
   0x8   : > { %p30_p4 = por %p29_p2, %p28_p1  ;;  %p35_p5 = scmp.eq.s32.totalorder %s686_s10, 0 }
   0x9   : > { %p709_p6 = scmp.lt.s32.totalorder %s814_s9, 2  ;;  %s84_s16 = sand.u32 1, %s810_s8  }
   0xa   : > { %p869_p7 = por %p35_p5, %p34_p3  ;;  %s701_s17 = smul.u32 48, %s84_s16 }
   0xb   : > { %s700_s18 = smul.u32 48, %s814_s9  ;;  %p875_p8 = pnand %p709_p6, %p30_p4 }
   0xc   : > { %s88_s23 = scalar_lea.vmem [#allocation2], %s701_s17  ;;  %p692_p9 = scmp.ge.s32.totalorder %s814_s9, 1 }
   0xd   : > { %s94_s22 = scalar_lea.hbm %s1164_s0, %s700_s18  ;;  %s97_s24 = sshll.u32 %s88_s23, 4  ;;  %s98_s24 = int_to_ptr.vmem [resolvable:$true] %s97_s24 }
   0xe   : > { %s95_s25 = sshll.u32 %s94_s22, 4  ;;  %s85_s26 = scalar_lea.sflag [#allocation3], %s84_s16  ;;  %s96_s25 = int_to_ptr.hbm [resolvable:$true] %s95_s25 }
   0xf   : > { %s750_s27 = sshra.s32 %s96_s25, 4  ;;  %p754_p11 = pneg %p875_p8  ;;  %s751_s27 = int_to_ptr.hbm [resolvable:$true] %s750_s27 }
  0x10   : > { %s752_s28 = scalar_lea.hbm %s751_s27, 48  ;;  %s757_s2 = scalar_lea.hbm %s1164_s0, 96 }
  0x11   : > { %p753_p10 = scmp.ne.s32.totalorder %s751_s27, %s752_s28  ;;  %p758_p0 = scmp.lt.s32.totalorder %s751_s27, %s1164_s0 }
  0x12   : > { %p759_p1 = scmp.lt.s32.totalorder %s757_s2, %s752_s28 }
  0x13   : > { %p755_p12 = pnand %p754_p11, %p753_p10 }
  0x14   : > { %p760_p2 = por %p759_p1, %p758_p0 }
  0x15   : > { %p756_p13 = pneg %p755_p12 }
  0x17   : > { %p761_p3 = pnand %p760_p2, %p756_p13 }
  0x19   : > { %764 = shalt.err (!%p761_p3)
}
  0x1a   : > { %s816_s5 = smov 128   ;;  %s817_s6 = smov 8  }
  0x1b   : > { %708 = dma.hbm_to_vmem [thread:$0]  (!%p875_p8), %s96_s25, 768, %s98_s24, %s85_s26, %s816_s5, %s816_s5, %s817_s6  }
  0x1c   : > { %p105_p4 = scmp.lt.s32.totalorder %s814_s9, 3 }
  0x1e   : > { %p106_p5 = pnand %p692_p9, %p105_p4 }
  0x1f   : > { %s111_s12 = sand.u32 (!%p106_p5), 1, %s806_s7  }
  0x20   : > { %109 = sbr.rel (%p106_p5) target bundleno = 490 (0x1ea), region = 24  ;;  %s112_s16 = scalar_lea.sflag (!%p106_p5), [#allocation3], %s111_s12 }
  0x21   : > { %s702_s13 = smul.u32 (!%p106_p5), 48, %s111_s12 }
  0x23   : > { %s897_s17 = scalar_lea.vmem (!%p106_p5), [#allocation2], %s702_s13 }
  0x25   : > { %797 = dma.done.wait (%p869_p7), %s112_s16, 768  }
  0x26   : > { %799 = vsyncadd (%p869_p7), %s112_s16, 4294966528  ;;  %vm162_vm0 = vcmask 1041408   ;;  %vm193_vm1 = vcmask 1040384   ;;  %v148_v0 = vld [vmem:[%s897_s17 + $0x20] sm:$0xff]  ;;  %v149_v1 = vld [vmem:[%s897_s17 + $0x28] sm:$0xff]  ;;  %vm203_vm2 = vcmask 1042432  }
  0x27   : > { %vm213_vm3 = vcmask 1043456   ;;  %vm247_vm4 = vcmask 1045504   ;;  %v146_v2 = vld [vmem:[%s897_s17 + $0x10] sm:$0xff]  ;;  %v155_v3 = vrot.slane %v148_v0, 2  ;;  %v169_v4 = vrot.slane %v148_v0, 6  ;;  %v147_v7 = vld [vmem:[%s897_s17 + $0x18] sm:$0xff] }
  0x28   : > { %v170_v5 = vrot.slane %v149_v1, 6  ;;  %v183_v6 = vrot.slane %v149_v1, 4  ;;  %v189_v8 = vrot.slane %v149_v1, 2  ;;  %v154_v9 = vrot.slane %v146_v2, 2  ;;  %v144_v44 = vld [vmem:[%s897_s17] sm:$0xff]  ;;  %v145_v56 = vld [vmem:[%s897_s17 + $0x8] sm:$0xff] }
  0x29   : > { %v166_v10 = vrot.slane %v146_v2, 6  ;;  %v167_v11 = vrot.slane %v147_v7, 6  ;;  %v196_v13 = vsel %vm193_vm1, %v155_v3, %v148_v0  ;;  %vm299_vm5 = vcmask 1046528   ;;  %s818_s15 = smov 126   ;;  %s819_s18 = smov 2  }
  0x2a   : > { %v908_v12 = vsel %vm162_vm0, %v169_v4, %v170_v5  ;;  %v202_v14 = vsel %vm162_vm0, %v170_v5, %v183_v6  ;;  %v182_v15 = vrot.slane %v147_v7, 4  ;;  %v199_v16 = vsel %vm162_vm0, %v196_v13, %v169_v4  ;;  %s820_s19 = smov 4   ;;  %s821_s20 = smov 6  }
  0x2b   : > { %v914_v17 = vsel %vm203_vm2, %v202_v14, %v189_v8  ;;  %v225_v18 = vrot.slane %v908_v12, 4  ;;  %v259_v19 = vrot.slane %v908_v12, 2  ;;  %v224_v20 = vrot.slane %v199_v16, 4  ;;  %s822_s21 = smov 124   ;;  %s823_s22 = smov 127  }
  0x2c   : > { %v258_v21 = vrot.slane %v199_v16, 2  ;;  %v261_v22 = vrot.slane %v914_v17, 2  ;;  %v333_v23 = vmul.f32 0.375, %v199_v16  ;;  %v920_v24 = vmul.f32 0.375, %v908_v12  ;;  %s137_s23 = smul.u32 3, %s686_s10 }
  0x2d   : > { %v923_v25 = vsel %vm162_vm0, %v166_v10, %v167_v11  ;;  %v188_v26 = vrot.slane %v147_v7, 2  ;;  %v195_v27 = vsel %vm193_vm1, %v154_v9, %v146_v2  ;;  %v226_v28 = vsel %vm213_vm3, %v224_v20, %v225_v18 }
  0x2e   : > { %v260_v29 = vsel %vm247_vm4, %v258_v21, %v259_v19  ;;  %v262_v30 = vsel %vm247_vm4, %v259_v19, %v261_v22  ;;  %v355_v31 = vrot.slane %v333_v23, 2  ;;  %v239_v32 = vadd.f32 %v226_v28, %v199_v16  ;;  %p138_p6 = scmp.lt.s32.totalorder %s137_s23, 5 }
  0x2f   : > { %v278_v33 = vadd.f32 %v260_v29, %v199_v16  ;;  %v279_v34 = vadd.f32 %v262_v30, %v908_v12  ;;  %v356_v35 = vrot.slane %v920_v24, 2  ;;  %v198_v36 = vsel %vm162_vm0, %v195_v27, %v166_v10 }
  0x30   : > { %v201_v37 = vsel %vm162_vm0, %v167_v11, %v182_v15  ;;  %v220_v38 = vrot.slane %v923_v25, 4  ;;  %v254_v39 = vrot.slane %v923_v25, 2  ;;  %v245_v40 = vmul.f32 0.0625, %v239_v32  ;;  %s1173_s23 = smov (!%p138_p6, %s137_s23), 5 }
  0x31   : > { %v287_v41 = vmul.f32 0.25, %v278_v33  ;;  %v939_v42 = vmul.f32 0.25, %v279_v34  ;;  %v357_v43 = vsel %vm247_vm4, %v355_v31, %v356_v35  ;;  %v946_v45 = vsel %vm203_vm2, %v201_v37, %v188_v26  ;;  %s699_s24 = sshll.u32 %s1173_s23, 4 }
  0x32   : > { %v219_v46 = vrot.slane %v198_v36, 4  ;;  %v253_v47 = vrot.slane %v198_v36, 2  ;;  %v330_v48 = vmul.f32 0.375, %v198_v36  ;;  %v256_v51 = vrot.slane %v946_v45, 2  ;;  %s1132_s27 = scalar_lea.vmem %s1165_s1, %s699_s24 }
  0x33   : > { %v310_v49 = vrot.slane %v287_v41, 1  ;;  %v311_v50 = vrot.slane %v939_v42, 1  ;;  %v951_v52 = vmul.f32 0.375, %v923_v25  ;;  %v153_v57 = vrot.slane %v144_v44, 2 }
  0x34   : > { %v221_v53 = vsel %vm213_vm3, %v219_v46, %v220_v38  ;;  %v255_v54 = vsel %vm247_vm4, %v253_v47, %v254_v39  ;;  %v350_v55 = vrot.slane %v330_v48, 2  ;;  %v257_v60 = vsel %vm247_vm4, %v254_v39, %v256_v51 }
  0x35   : > { %v312_v58 = vsel %vm299_vm5, %v310_v49, %v311_v50  ;;  %v237_v59 = vadd.f32 %v221_v53, %v198_v36  ;;  %v275_v61 = vadd.f32 %v255_v54, %v198_v36  ;;  %v276_v63 = vadd.f32 %v257_v60, %v923_v25 }
  0x36   : > { %v325_v62 = vadd.f32 %v312_v58, %v245_v40  ;;  %v351_v0 = vrot.slane %v951_v52, 2  ;;  %v163_v1 = vrot.slane %v144_v44, 6  ;;  %v164_v4 = vrot.slane %v145_v56, 6 }
  0x37   : > { %v243_v2 = vmul.f32 0.0625, %v237_v59  ;;  %v284_v3 = vmul.f32 0.25, %v275_v61  ;;  %v181_v5 = vrot.slane %v145_v56, 4  ;;  %v968_v7 = vmul.f32 0.25, %v276_v63 }
  0x38   : > { %v966_v6 = vadd.f32 %v357_v43, %v325_v62  ;;  %v352_v8 = vsel %vm247_vm4, %v350_v55, %v351_v0  ;;  %v187_v9 = vrot.slane %v145_v56, 2  ;;  %v165_v11 = vsel %vm162_vm0, %v163_v1, %v164_v4 }
  0x39   : > { %v305_v10 = vrot.slane %v284_v3, 1  ;;  %v194_v13 = vsel %vm193_vm1, %v153_v57, %v144_v44  ;;  %v200_v14 = vsel %vm162_vm0, %v164_v4, %v181_v5  ;;  %v306_v15 = vrot.slane %v968_v7, 1 }
  0x3a   : > { %386 = vrot.lane.b32.xlu2 %v966_v6, %s818_s15  ;;  %v197_v16 = vsel %vm162_vm0, %v194_v13, %v163_v1  ;;  %v204_v19 = vsel %vm203_vm2, %v200_v14, %v187_v9  ;;  %v215_v20 = vrot.slane %v165_v11, 4  ;;  %v249_v26 = vrot.slane %v165_v11, 2 }
  0x3b   : > { %v214_v21 = vrot.slane %v197_v16, 4  ;;  %v248_v23 = vrot.slane %v197_v16, 2  ;;  %v251_v27 = vrot.slane %v204_v19, 2  ;;  %v307_v28 = vsel %vm299_vm5, %v305_v10, %v306_v15 }
  0x3c   : > { %v327_v29 = vmul.f32 0.375, %v197_v16  ;;  %v328_v30 = vmul.f32 0.375, %v165_v11  ;;  %v227_v31 = vrot.slane %v914_v17, 4  ;;  %v323_v32 = vadd.f32 %v307_v28, %v243_v2 }
  0x3d   : > { %v216_v33 = vsel %vm213_vm3, %v214_v21, %v215_v20  ;;  %v250_v34 = vsel %vm247_vm4, %v248_v23, %v249_v26  ;;  %v252_v36 = vsel %vm247_vm4, %v249_v26, %v251_v27  ;;  %v280_v47 = vadd.f32 %v261_v22, %v914_v17 }
  0x3e   : > { %v235_v37 = vadd.f32 %v216_v33, %v197_v16  ;;  %v272_v39 = vadd.f32 %v250_v34, %v197_v16  ;;  %v273_v40 = vadd.f32 %v252_v36, %v165_v11  ;;  %v345_v41 = vrot.slane %v327_v29, 2 }
  0x3f   : > { %v986_v43 = vadd.f32 %v352_v8, %v323_v32  ;;  %v346_v44 = vrot.slane %v328_v30, 2  ;;  %v228_v46 = vsel %vm213_vm3, %v225_v18, %v227_v31  ;;  %v289_v56 = vmul.f32 0.25, %v280_v47 }
  0x40   : > { %v241_v48 = vmul.f32 0.0625, %v235_v37  ;;  %v281_v49 = vmul.f32 0.25, %v272_v39  ;;  %v282_v53 = vmul.f32 0.25, %v273_v40  ;;  %v240_v54 = vadd.f32 %v228_v46, %v908_v12 }
  0x41   : > { %382 = vrot.lane.b32.xlu1 %v986_v43, %s818_s15  ;;  %v347_v55 = vsel %vm247_vm4, %v345_v41, %v346_v44  ;;  %v335_v57 = vmul.f32 0.375, %v914_v17  ;;  %v222_v58 = vrot.slane %v946_v45, 4  ;;  %v277_v22 = vadd.f32 %v256_v51, %v946_v45 }
  0x42   : > { %v300_v18 = vrot.slane %v281_v49, 1  ;;  %v301_v59 = vrot.slane %v282_v53, 1  ;;  %v246_v60 = vmul.f32 0.0625, %v240_v54  ;;  %v313_v61 = vrot.slane %v289_v56, 1 }
  0x43   : > { %v358_v62 = vrot.slane %v335_v57, 2  ;;  %v223_v12 = vsel %vm213_vm3, %v220_v38, %v222_v58  ;;  %v332_v63 = vmul.f32 0.375, %v946_v45  ;;  %v286_v2 = vmul.f32 0.25, %v277_v22 }
  0x44   : > { %v302_v1 = vsel %vm299_vm5, %v300_v18, %v301_v59  ;;  %v238_v17 = vadd.f32 %v223_v12, %v923_v25  ;;  %v217_v3 = vrot.slane %v204_v19, 4  ;;  %v314_v5 = vsel %vm299_vm5, %v311_v50, %v313_v61 }
  0x45   : > { %v321_v4 = vadd.f32 %v302_v1, %v241_v48  ;;  %v359_v51 = vsel %vm247_vm4, %v356_v35, %v358_v62  ;;  %v353_v7 = vrot.slane %v332_v63, 2  ;;  %v326_v8 = vadd.f32 %v314_v5, %v246_v60 }
  0x46   : > { %v244_v38 = vmul.f32 0.0625, %v238_v17  ;;  %v308_v9 = vrot.slane %v286_v2, 1  ;;  %v218_v45 = vsel %vm213_vm3, %v215_v20, %v217_v3  ;;  %v274_v13 = vadd.f32 %v251_v27, %v204_v19 }
  0x47   : > { %v1016_v10 = vadd.f32 %v347_v55, %v321_v4  ;;  %v236_v25 = vadd.f32 %v218_v45, %v165_v11  ;;  %v371_v14 = vadd.f32 %v359_v51, %v326_v8  ;;  %v354_v42 = vsel %vm247_vm4, %v351_v0, %v353_v7 }
  0x48   : > { %v309_v16 = vsel %vm299_vm5, %v306_v15, %v308_v9  ;;  %v329_v24 = vmul.f32 0.375, %v204_v19  ;;  %v283_v50 = vmul.f32 0.25, %v274_v13  ;;  %vm450_vm6 = vcmask 7168  }
  0x49   : > { %378 = vrot.lane.b32.xlu0 %v1016_v10, %s818_s15  ;;  %v324_v35 = vadd.f32 %v309_v16, %v244_v38  ;;  %388 = vrot.lane.b32.xlu2 %v371_v14, %s818_s15  ;;  %v242_v20 = vmul.f32 0.0625, %v236_v25  ;;  %vm457_vm7 = vcmask 15360   ;;  %vm464_vm8 = vcmask 146432  }
  0x4a   : > { %v348_v21 = vrot.slane %v329_v24, 2  ;;  %v303_v11 = vrot.slane %v283_v50, 1  ;;  %vm471_vm9 = vcmask 154624   ;;  %vm610_vm10 = vcmask 130048  }
  0x4b   : > { %v1025_v23 = vadd.f32 %v354_v42, %v324_v35 }
  0x4c   : > { %v304_v52 = vsel %vm299_vm5, %v301_v59, %v303_v11  ;;  %v349_v0 = vsel %vm247_vm4, %v346_v44, %v348_v21 }
  0x4d   : > { %384 = vrot.lane.b32.xlu1 %v1025_v23, %s818_s15  ;;  %v322_v15 = vadd.f32 %v304_v52, %v242_v20 }
  0x4f   : > { %v367_v19 = vadd.f32 %v349_v0, %v322_v15 }
  0x51   : > { %380 = vrot.lane.b32.xlu0 %v367_v19, %s818_s15  ;;  %400 = vrot.lane.b32.xlu2 %v986_v43, %s819_s18 }
  0x55   : > { %398 = vrot.lane.b32.xlu1 %v367_v19, %s819_s18 }
  0x59   : > { %396 = vrot.lane.b32.xlu0 %v1016_v10, %s819_s18  ;;  %406 = vrot.lane.b32.xlu2 %v371_v14, %s819_s18 }
  0x5d   : > { %404 = vrot.lane.b32.xlu1 %v966_v6, %s819_s18 }
  0x61   : > { %402 = vrot.lane.b32.xlu0 %v1025_v23, %s819_s18  ;;  %418 = vrot.lane.b32.xlu2 %v986_v43, %s820_s19 }
  0x65   : > { %416 = vrot.lane.b32.xlu1 %v367_v19, %s820_s19 }
  0x69   : > { %414 = vrot.lane.b32.xlu0 %v1016_v10, %s820_s19  ;;  %424 = vrot.lane.b32.xlu2 %v371_v14, %s820_s19 }
  0x6d   : > { %422 = vrot.lane.b32.xlu1 %v966_v6, %s820_s19 }
  0x71   : > { %420 = vrot.lane.b32.xlu0 %v1025_v23, %s820_s19  ;;  %436 = vrot.lane.b32.xlu2 %v986_v43, %s821_s20 }
  0x75   : > { %434 = vrot.lane.b32.xlu1 %v367_v19, %s821_s20 }
  0x79   : > { %432 = vrot.lane.b32.xlu0 %v1016_v10, %s821_s20  ;;  %442 = vrot.lane.b32.xlu2 %v371_v14, %s821_s20 }
  0x7d   : > { %440 = vrot.lane.b32.xlu1 %v966_v6, %s821_s20 }
  0x81   : > { %438 = vrot.lane.b32.xlu0 %v1025_v23, %s821_s20 }
  0x94   : > { %v387_v26 = vpop.permute.xlu2 %386 }
  0x95   : > { %v455_v1 = vsel %vm450_vm6, %v387_v26, %v966_v6 }
  0xa3   : > { %v389_v27 = vpop.permute.xlu2 %388 }
  0xa4   : > { %v456_v41 = vsel %vm450_vm6, %v389_v27, %v371_v14 }
  0xab   : > { %v401_v28 = vpop.permute.xlu2 %400 }
  0xb3   : > { %v407_v29 = vpop.permute.xlu2 %406  ;;  %v383_v30 = vpop.permute.xlu1 %382 }
  0xb4   : > { %v453_v39 = vsel %vm450_vm6, %v383_v30, %v986_v43  ;;  %v463_v49 = vsel %vm457_vm7, %v456_v41, %v407_v29 }
  0xb5   : > { %v460_v40 = vsel %vm457_vm7, %v453_v39, %v401_v28 }
  0xbb   : > { %v379_v31 = vpop.permute.xlu0 %378  ;;  %v419_v32 = vpop.permute.xlu2 %418 }
  0xbc   : > { %v467_v44 = vsel %vm464_vm8, %v460_v40, %v419_v32  ;;  %v451_v63 = vsel %vm450_vm6, %v379_v31, %v1016_v10 }
  0xbf   : > { %v385_v33 = vpop.permute.xlu1 %384 }
  0xc0   : > { %v454_v38 = vsel %vm450_vm6, %v385_v33, %v1025_v23 }
  0xc3   : > { %v381_v34 = vpop.permute.xlu0 %380  ;;  %v425_v36 = vpop.permute.xlu2 %424 }
  0xc4   : > { %v470_v43 = vsel %vm464_vm8, %v463_v49, %v425_v36  ;;  %v452_v60 = vsel %vm450_vm6, %v381_v34, %v367_v19 }
  0xc7   : > { %v399_v37 = vpop.permute.xlu1 %398 }
  0xc8   : > { %v459_v22 = vsel %vm457_vm7, %v452_v60, %v399_v37 }
  0xcb   : > { %v397_v46 = vpop.permute.xlu0 %396  ;;  %v437_v47 = vpop.permute.xlu2 %436 }
  0xcc   : > { %v1050_v48 = vsel %vm471_vm9, %v467_v44, %v437_v47  ;;  %v458_v17 = vsel %vm457_vm7, %v451_v63, %v397_v46 }
  0xcd   : > { %518 = vrot.lane.b32.xlu2 %v1050_v48, %s818_s15  ;;  %v576_v4 = vmul.f32 0.375, %v1050_v48 }
  0xcf   : > { %v405_v53 = vpop.permute.xlu1 %404 }
  0xd0   : > { %v462_v51 = vsel %vm457_vm7, %v455_v1, %v405_v53 }
  0xd3   : > { %v403_v54 = vpop.permute.xlu0 %402  ;;  %v443_v55 = vpop.permute.xlu2 %442 }
  0xd4   : > { %v1057_v56 = vsel %vm471_vm9, %v470_v43, %v443_v55  ;;  %v461_v9 = vsel %vm457_vm7, %v454_v38, %v403_v54 }
  0xd5   : > { %524 = vrot.lane.b32.xlu2 %v1057_v56, %s818_s15  ;;  %v579_v21 = vmul.f32 0.375, %v1057_v56 }
  0xd7   : > { %v417_v57 = vpop.permute.xlu1 %416 }
  0xd8   : > { %v466_v61 = vsel %vm464_vm8, %v459_v22, %v417_v57 }
  0xdb   : > { %v415_v58 = vpop.permute.xlu0 %414 }
  0xdc   : > { %v465_v2 = vsel %vm464_vm8, %v458_v17, %v415_v58 }
  0xdd   : > { %488 = vrot.lane.b32.xlu2 %v1050_v48, %s822_s21 }
  0xdf   : > { %v423_v18 = vpop.permute.xlu1 %422 }
  0xe0   : > { %v469_v7 = vsel %vm464_vm8, %v462_v51, %v423_v18 }
  0xe3   : > { %v421_v59 = vpop.permute.xlu0 %420 }
  0xe4   : > { %v468_v45 = vsel %vm464_vm8, %v461_v9, %v421_v59 }
  0xe5   : > { %494 = vrot.lane.b32.xlu2 %v1057_v56, %s822_s21 }
  0xe7   : > { %v435_v62 = vpop.permute.xlu1 %434 }
  0xe8   : > { %v1069_v12 = vsel %vm471_vm9, %v466_v61, %v435_v62 }
  0xe9   : > { %516 = vrot.lane.b32.xlu1 %v1069_v12, %s818_s15  ;;  %v575_v13 = vmul.f32 0.375, %v1069_v12 }
  0xeb   : > { %v433_v3 = vpop.permute.xlu0 %432 }
  0xec   : > { %v1081_v5 = vsel %vm471_vm9, %v465_v2, %v433_v3 }
  0xed   : > { %514 = vrot.lane.b32.xlu0 %v1081_v5, %s818_s15  ;;  %590 = vrot.lane.b32.xlu2 %v576_v4, %s818_s15  ;;  %v574_v14 = vmul.f32 0.375, %v1081_v5 }
  0xef   : > { %v441_v6 = vpop.permute.xlu1 %440 }
  0xf0   : > { %v1089_v8 = vsel %vm471_vm9, %v469_v7, %v441_v6 }
  0xf1   : > { %522 = vrot.lane.b32.xlu1 %v1089_v8, %s818_s15  ;;  %v578_v33 = vmul.f32 0.375, %v1089_v8 }
  0xf3   : > { %v439_v10 = vpop.permute.xlu0 %438 }
  0xf4   : > { %v1098_v25 = vsel %vm471_vm9, %v468_v45, %v439_v10 }
  0xf5   : > { %520 = vrot.lane.b32.xlu0 %v1098_v25, %s818_s15  ;;  %v577_v34 = vmul.f32 0.375, %v1098_v25 }
  0xf9   : > { %486 = vrot.lane.b32.xlu1 %v1069_v12, %s822_s21 }
  0xfd   : > { %484 = vrot.lane.b32.xlu0 %v1081_v5, %s822_s21 }
 0x101   : > { %492 = vrot.lane.b32.xlu1 %v1089_v8, %s822_s21 }
 0x105   : > { %490 = vrot.lane.b32.xlu0 %v1098_v25, %s822_s21 }
 0x109   : > { %588 = vrot.lane.b32.xlu1 %v575_v13, %s818_s15 }
 0x10d   : > { %586 = vrot.lane.b32.xlu0 %v574_v14, %s818_s15 }
 0x127   : > { %v519_v16 = vpop.permute.xlu2 %518 }
 0x128   : > { %v534_v42 = vadd.f32 %v519_v16, %v1050_v48 }
 0x12a   : > { %v540_v24 = vmul.f32 0.25, %v534_v42 }
 0x12c   : > { %554 = vrot.lane.b32.xlu2 %v540_v24, %s823_s22 }
 0x12f   : > { %v525_v35 = vpop.permute.xlu2 %524 }
 0x130   : > { %v537_v50 = vadd.f32 %v525_v35, %v1057_v56 }
 0x132   : > { %v543_v20 = vmul.f32 0.25, %v537_v50 }
 0x134   : > { %560 = vrot.lane.b32.xlu2 %v543_v20, %s823_s22 }
 0x137   : > { %v489_v31 = vpop.permute.xlu2 %488 }
 0x138   : > { %v504_v39 = vadd.f32 %v489_v31, %v1050_v48 }
 0x13a   : > { %v510_v40 = vmul.f32 0.0625, %v504_v39 }
 0x13c   : > { %596 = vrot.lane.b32.xlu2 %v579_v21, %s818_s15 }
 0x13f   : > { %v495_v36 = vpop.permute.xlu2 %494 }
 0x140   : > { %v507_v49 = vadd.f32 %v495_v36, %v1057_v56 }
 0x142   : > { %v513_v48 = vmul.f32 0.0625, %v507_v49 }
 0x147   : > { %v591_v37 = vpop.permute.xlu2 %590 }
 0x15b   : > { %v517_v23 = vpop.permute.xlu1 %516 }
 0x15c   : > { %v533_v11 = vadd.f32 %v517_v23, %v1069_v12 }
 0x15e   : > { %v539_v52 = vmul.f32 0.25, %v533_v11 }
 0x15f   : > { %v515_v0 = vpop.permute.xlu0 %514 }
 0x160   : > { %552 = vrot.lane.b32.xlu1 %v539_v52, %s823_s22  ;;  %v532_v15 = vadd.f32 %v515_v0, %v1081_v5 }
 0x162   : > { %v538_v19 = vmul.f32 0.25, %v532_v15 }
 0x163   : > { %v523_v26 = vpop.permute.xlu1 %522 }
 0x164   : > { %v536_v27 = vadd.f32 %v523_v26, %v1089_v8  ;;  %550 = vrot.lane.b32.xlu0 %v538_v19, %s823_s22 }
 0x166   : > { %v542_v28 = vmul.f32 0.25, %v536_v27 }
 0x167   : > { %v521_v29 = vpop.permute.xlu0 %520 }
 0x168   : > { %558 = vrot.lane.b32.xlu1 %v542_v28, %s823_s22  ;;  %v535_v30 = vadd.f32 %v521_v29, %v1098_v25 }
 0x16a   : > { %v541_v32 = vmul.f32 0.25, %v535_v30 }
 0x16b   : > { %v487_v55 = vpop.permute.xlu1 %486 }
 0x16c   : > { %556 = vrot.lane.b32.xlu0 %v541_v32, %s823_s22  ;;  %v503_v60 = vadd.f32 %v487_v55, %v1069_v12 }
 0x16e   : > { %v509_v61 = vmul.f32 0.0625, %v503_v60 }
 0x16f   : > { %v485_v57 = vpop.permute.xlu0 %484 }
 0x170   : > { %594 = vrot.lane.b32.xlu1 %v578_v33, %s818_s15  ;;  %v502_v62 = vadd.f32 %v485_v57, %v1081_v5 }
 0x172   : > { %v508_v17 = vmul.f32 0.0625, %v502_v62 }
 0x173   : > { %v493_v58 = vpop.permute.xlu1 %492 }
 0x174   : > { %592 = vrot.lane.b32.xlu0 %v577_v34, %s818_s15  ;;  %v506_v7 = vadd.f32 %v493_v58, %v1089_v8 }
 0x176   : > { %v512_v12 = vmul.f32 0.0625, %v506_v7 }
 0x177   : > { %v491_v18 = vpop.permute.xlu0 %490 }
 0x178   : > { %v505_v5 = vadd.f32 %v491_v18, %v1098_v25 }
 0x17a   : > { %v511_v10 = vmul.f32 0.0625, %v505_v5 }
 0x17b   : > { %v589_v59 = vpop.permute.xlu1 %588 }
 0x17f   : > { %v587_v22 = vpop.permute.xlu0 %586 }
 0x186   : > { %v555_v41 = vpop.permute.xlu2 %554 }
 0x187   : > { %v570_v44 = vadd.f32 %v555_v41, %v510_v40 }
 0x189   : > { %v606_v46 = vadd.f32 %v591_v37, %v570_v44 }
 0x18b   : > { %613 = vst.msk [vmem:[%s1132_s27 + $0x10] sm:$0xff] %vm610_vm10, %v606_v46 }
 0x18e   : > { %v561_v47 = vpop.permute.xlu2 %560 }
 0x18f   : > { %v573_v53 = vadd.f32 %v561_v47, %v513_v48 }
 0x196   : > { %v597_v43 = vpop.permute.xlu2 %596 }
 0x197   : > { %v609_v54 = vadd.f32 %v597_v43, %v573_v53 }
 0x199   : > { %616 = vst.msk [vmem:[%s1132_s27 + $0x28] sm:$0xff] %vm610_vm10, %v609_v54 }
 0x1d2   : > { %v553_v56 = vpop.permute.xlu1 %552 }
 0x1d3   : > { %v569_v63 = vadd.f32 %v553_v56, %v509_v61 }
 0x1d5   : > { %v605_v1 = vadd.f32 %v589_v59, %v569_v63 }
 0x1d6   : > { %v551_v2 = vpop.permute.xlu0 %550 }
 0x1d7   : > { %612 = vst.msk [vmem:[%s1132_s27 + $0x8] sm:$0xff] %vm610_vm10, %v605_v1  ;;  %v568_v3 = vadd.f32 %v551_v2, %v508_v17 }
 0x1d9   : > { %v604_v4 = vadd.f32 %v587_v22, %v568_v3 }
 0x1da   : > { %v559_v51 = vpop.permute.xlu1 %558 }
 0x1db   : > { %611 = vst.msk [vmem:[%s1132_s27] sm:$0xff] %vm610_vm10, %v604_v4  ;;  %v572_v38 = vadd.f32 %v559_v51, %v512_v12 }
 0x1de   : > { %v557_v6 = vpop.permute.xlu0 %556 }
 0x1df   : > { %v571_v13 = vadd.f32 %v557_v6, %v511_v10 }
 0x1e2   : > { %v595_v9 = vpop.permute.xlu1 %594 }
 0x1e3   : > { %v608_v45 = vadd.f32 %v595_v9, %v572_v38 }
 0x1e5   : > { %615 = vst.msk [vmem:[%s1132_s27 + $0x20] sm:$0xff] %vm610_vm10, %v608_v45 }
 0x1e6   : > { %v593_v14 = vpop.permute.xlu0 %592 }
 0x1e7   : > { %v607_v16 = vadd.f32 %v593_v14, %v571_v13 }
 0x1e9   : > { %614 = vst.msk [vmem:[%s1132_s27 + $0x18] sm:$0xff] %vm610_vm10, %v607_v16 }
 0x1ea PF: > { %p11_p7 = scmp.ge.s32.totalorder %s854_s11, 4   ;;  %s1168_s6 = smov %s806_s7 }
 0x1eb   : > { %s1169_s7 = smov %s810_s8  ;;  %s1170_s8 = smov %s864_s14 }
 0x1ec   : > { %s1171_s9 = smov %s854_s11  ;;  %13 = sbr.rel (!%p11_p7) target bundleno = 3 (0x3), region = 64 }
 0x1f1   :  { %641 = vsyncpa [#allocation3], 1 }
 0x1f2   :  { %643 = vsyncpa [#allocation3 + $0x1], 1 }

// kernel: gauss_pyramid.4
= control target key start
LH: loop header
LB: loop body
LE: loop exit
PB: predicated region body
PF: predicated region fallthrough
CT: control target
= control target key end

     0   :  { %s489_s6 = smov 0   ;;  %s561_s0 = inlined_call_operand.vmem [shape: f32[6,8,8], index: 0, kind: input, shape index: {}]   ;;  %s562_s1 = inlined_call_operand.vmem [shape: f32[6,8,8], index: 1, kind: output, shape index: {}]  }
   0x1 LB: > { %s442_s7 = sadd.s32 4294967295, %s471_s6   ;;  %p446_p0 = scmp.ge.s32.totalorder %s471_s6, 1  ;;  %s471_s6 = sphi %s489_s6, %s11_s6  }
   0x2   : > { %p88_p1 = scmp.lt.s32.totalorder %s471_s6, 3 }
   0x4   : > { %p89_p2 = pnand %p446_p0, %p88_p1 }
   0x5   : > { %s108_s8 = smul.u32 (!%p89_p2), 3, %s442_s7  ;;  %s473_s13 = smov (!%p89_p2), 126  }
   0x6   : > { %92 = sbr.rel (%p89_p2) target bundleno = 422 (0x1a6), region = 24  ;;  %s474_s14 = smov (!%p89_p2), 2  }
   0x7   : > { %p109_p3 = scmp.lt.s32.totalorder (!%p89_p2), %s108_s8, 5  ;;  %s475_s15 = smov (!%p89_p2), 4  }
   0x8   : > { %s476_s16 = smov (!%p89_p2), 6   ;;  %s477_s17 = smov (!%p89_p2), 124  }
   0x9   : > { %s478_s18 = smov (!%p89_p2), 127  }
   0xb   : > { %s564_s8 = smov (!%p109_p3, %s108_s8), 5  ;;  %vm144_vm0 = vcmask 1040384   ;;  %vm148_vm1 = vcmask 1041408   ;;  %vm155_vm2 = vcmask 1042432   ;;  %vm165_vm3 = vcmask 1043456  }
   0xc   : > { %s447_s9 = sshll.u32 %s564_s8, 3  ;;  %vm184_vm4 = vcmask 1045504   ;;  %vm218_vm5 = vcmask 1046528   ;;  %vm300_vm6 = vcmask 7168   ;;  %vm304_vm7 = vcmask 15360  }
   0xd   : > { %s112_s12 = scalar_lea.vmem %s561_s0, %s447_s9  ;;  %vm308_vm8 = vcmask 80896   ;;  %vm312_vm9 = vcmask 89088   ;;  %s118_s21 = scalar_lea.vmem %s562_s1, %s447_s9  ;;  %vm382_vm10 = vcmask 64512  }
   0xe   : > { %v122_v0 = vld [vmem:[%s112_s12 + $0x10] sm:$0xff]  ;;  %v120_v1 = vld [vmem:[%s112_s12] sm:$0xff]  ;;  %v121_v2 = vld [vmem:[%s112_s12 + $0x8] sm:$0xff] }
   0xf   : > { %v128_v3 = vrot.slane %v122_v0, 2  ;;  %v134_v4 = vrot.slane %v122_v0, 6  ;;  %v140_v5 = vrot.slane %v122_v0, 4  ;;  %v126_v6 = vrot.slane %v120_v1, 2 }
  0x10   : > { %v132_v7 = vrot.slane %v120_v1, 6  ;;  %v138_v8 = vrot.slane %v120_v1, 4  ;;  %v127_v9 = vrot.slane %v121_v2, 2  ;;  %v133_v10 = vrot.slane %v121_v2, 6 }
  0x11   : > { %v147_v11 = vsel %vm144_vm0, %v128_v3, %v122_v0  ;;  %v154_v12 = vsel %vm148_vm1, %v134_v4, %v140_v5  ;;  %v145_v13 = vsel %vm144_vm0, %v126_v6, %v120_v1  ;;  %v139_v14 = vrot.slane %v121_v2, 4 }
  0x12   : > { %v151_v15 = vsel %vm148_vm1, %v147_v11, %v134_v4  ;;  %v158_v16 = vsel %vm155_vm2, %v154_v12, %v128_v3  ;;  %v149_v17 = vsel %vm148_vm1, %v145_v13, %v132_v7  ;;  %v152_v18 = vsel %vm148_vm1, %v132_v7, %v138_v8 }
  0x13   : > { %v172_v19 = vrot.slane %v151_v15, 4  ;;  %v173_v20 = vrot.slane %v158_v16, 4  ;;  %v191_v21 = vrot.slane %v151_v15, 2  ;;  %v192_v22 = vrot.slane %v158_v16, 2 }
  0x14   : > { %v238_v23 = vmul.f32 0.375, %v151_v15  ;;  %v239_v24 = vmul.f32 0.375, %v158_v16  ;;  %v156_v25 = vsel %vm155_vm2, %v152_v18, %v126_v6  ;;  %v166_v26 = vrot.slane %v149_v17, 4 }
  0x15   : > { %v174_v27 = vsel %vm165_vm3, %v172_v19, %v173_v20  ;;  %v193_v28 = vsel %vm184_vm4, %v191_v21, %v192_v22  ;;  %v205_v29 = vadd.f32 %v192_v22, %v158_v16  ;;  %v167_v30 = vrot.slane %v156_v25, 4 }
  0x16   : > { %v180_v31 = vadd.f32 %v174_v27, %v151_v15  ;;  %v204_v32 = vadd.f32 %v193_v28, %v151_v15  ;;  %v252_v33 = vrot.slane %v238_v23, 2  ;;  %v253_v34 = vrot.slane %v239_v24, 2 }
  0x17   : > { %v211_v35 = vmul.f32 0.25, %v205_v29  ;;  %v168_v36 = vsel %vm165_vm3, %v166_v26, %v167_v30  ;;  %v185_v37 = vrot.slane %v149_v17, 2  ;;  %v186_v38 = vrot.slane %v156_v25, 2 }
  0x18   : > { %v183_v39 = vmul.f32 0.0625, %v180_v31  ;;  %v210_v40 = vmul.f32 0.25, %v204_v32  ;;  %v254_v41 = vsel %vm184_vm4, %v252_v33, %v253_v34  ;;  %v178_v42 = vadd.f32 %v168_v36, %v149_v17 }
  0x19   : > { %v226_v43 = vrot.slane %v211_v35, 1  ;;  %v187_v44 = vsel %vm184_vm4, %v185_v37, %v186_v38  ;;  %v201_v45 = vadd.f32 %v186_v38, %v156_v25  ;;  %v234_v46 = vmul.f32 0.375, %v149_v17 }
  0x1a   : > { %v225_v47 = vrot.slane %v210_v40, 1  ;;  %v181_v48 = vmul.f32 0.0625, %v178_v42  ;;  %v200_v49 = vadd.f32 %v187_v44, %v149_v17  ;;  %v235_v50 = vmul.f32 0.375, %v156_v25 }
  0x1b   : > { %v207_v51 = vmul.f32 0.25, %v201_v45  ;;  %v246_v52 = vrot.slane %v234_v46, 2  ;;  %v146_v53 = vsel %vm144_vm0, %v127_v9, %v121_v2  ;;  %v153_v54 = vsel %vm148_vm1, %v133_v10, %v139_v14 }
  0x1c   : > { %v227_v55 = vsel %vm218_vm5, %v225_v47, %v226_v43  ;;  %v206_v56 = vmul.f32 0.25, %v200_v49  ;;  %v247_v57 = vrot.slane %v235_v50, 2  ;;  %v150_v58 = vsel %vm148_vm1, %v146_v53, %v133_v10 }
  0x1d   : > { %v233_v59 = vadd.f32 %v227_v55, %v183_v39  ;;  %v220_v60 = vrot.slane %v207_v51, 1  ;;  %v157_v61 = vsel %vm155_vm2, %v153_v54, %v127_v9  ;;  %v169_v62 = vrot.slane %v150_v58, 4 }
  0x1e   : > { %v219_v63 = vrot.slane %v206_v56, 1  ;;  %v170_v0 = vrot.slane %v157_v61, 4  ;;  %v188_v1 = vrot.slane %v150_v58, 2  ;;  %v248_v4 = vsel %vm184_vm4, %v246_v52, %v247_v57 }
  0x1f   : > { %v260_v3 = vadd.f32 %v254_v41, %v233_v59  ;;  %v189_v2 = vrot.slane %v157_v61, 2  ;;  %v236_v7 = vmul.f32 0.375, %v150_v58  ;;  %v237_v8 = vmul.f32 0.375, %v157_v61 }
  0x20   : > { %v221_v5 = vsel %vm218_vm5, %v219_v63, %v220_v60  ;;  %v171_v6 = vsel %vm165_vm3, %v169_v62, %v170_v0 }
  0x21   : > { %268 = vrot.lane.b32.xlu1 %v260_v3, %s473_s13  ;;  %v231_v10 = vadd.f32 %v221_v5, %v181_v48  ;;  %v179_v11 = vadd.f32 %v171_v6, %v150_v58  ;;  %v190_v9 = vsel %vm184_vm4, %v188_v1, %v189_v2  ;;  %v203_v12 = vadd.f32 %v189_v2, %v157_v61 }
  0x22   : > { %v202_v13 = vadd.f32 %v190_v9, %v150_v58  ;;  %v249_v17 = vrot.slane %v236_v7, 2  ;;  %v250_v18 = vrot.slane %v237_v8, 2 }
  0x23   : > { %v258_v14 = vadd.f32 %v248_v4, %v231_v10  ;;  %v209_v15 = vmul.f32 0.25, %v203_v12  ;;  %v182_v19 = vmul.f32 0.0625, %v179_v11 }
  0x24   : > { %v208_v16 = vmul.f32 0.25, %v202_v13  ;;  %v251_v23 = vsel %vm184_vm4, %v249_v17, %v250_v18 }
  0x25   : > { %264 = vrot.lane.b32.xlu0 %v258_v14, %s473_s13  ;;  %v223_v20 = vrot.slane %v209_v15, 1 }
  0x26   : > { %v222_v21 = vrot.slane %v208_v16, 1 }
  0x28   : > { %v224_v22 = vsel %vm218_vm5, %v222_v21, %v223_v20 }
  0x29   : > { %v232_v24 = vadd.f32 %v224_v22, %v182_v19  ;;  %273 = vrot.lane.b32.xlu1 %v258_v14, %s474_s14 }
  0x2b   : > { %v259_v25 = vadd.f32 %v251_v23, %v232_v24 }
  0x2d   : > { %275 = vrot.lane.b32.xlu2 %v259_v25, %s474_s14  ;;  %266 = vrot.lane.b32.xlu0 %v259_v25, %s473_s13 }
  0x31   : > { %284 = vrot.lane.b32.xlu1 %v259_v25, %s475_s15 }
  0x35   : > { %277 = vrot.lane.b32.xlu2 %v260_v3, %s474_s14  ;;  %282 = vrot.lane.b32.xlu0 %v258_v14, %s475_s15 }
  0x39   : > { %293 = vrot.lane.b32.xlu1 %v259_v25, %s476_s16 }
  0x3d   : > { %286 = vrot.lane.b32.xlu2 %v260_v3, %s475_s15  ;;  %291 = vrot.lane.b32.xlu0 %v258_v14, %s476_s16 }
  0x45   : > { %295 = vrot.lane.b32.xlu2 %v260_v3, %s476_s16 }
  0x87   : > { %v276_v26 = vpop.permute.xlu2 %275 }
  0x8f   : > { %v278_v27 = vpop.permute.xlu2 %277 }
  0x93   : > { %v269_v28 = vpop.permute.xlu1 %268 }
  0x94   : > { %v303_v30 = vsel %vm300_vm6, %v269_v28, %v260_v3 }
  0x95   : > { %v307_v32 = vsel %vm304_vm7, %v303_v30, %v278_v27 }
  0x97   : > { %v287_v29 = vpop.permute.xlu2 %286  ;;  %v265_v31 = vpop.permute.xlu0 %264 }
  0x98   : > { %v311_v34 = vsel %vm308_vm8, %v307_v32, %v287_v29  ;;  %v301_v45 = vsel %vm300_vm6, %v265_v31, %v258_v14 }
  0x9b   : > { %v274_v33 = vpop.permute.xlu1 %273 }
  0x9c   : > { %v305_v46 = vsel %vm304_vm7, %v301_v45, %v274_v33 }
  0x9f   : > { %v296_v35 = vpop.permute.xlu2 %295  ;;  %v267_v36 = vpop.permute.xlu0 %266 }
  0xa0   : > { %v315_v37 = vsel %vm312_vm9, %v311_v34, %v296_v35  ;;  %v302_v39 = vsel %vm300_vm6, %v267_v36, %v259_v25 }
  0xa1   : > { %338 = vrot.lane.b32.xlu2 %v315_v37, %s473_s13  ;;  %v306_v41 = vsel %vm304_vm7, %v302_v39, %v276_v26  ;;  %v366_v53 = vmul.f32 0.375, %v315_v37 }
  0xa3   : > { %v285_v38 = vpop.permute.xlu1 %284 }
  0xa4   : > { %v310_v42 = vsel %vm308_vm8, %v306_v41, %v285_v38 }
  0xa7   : > { %v283_v40 = vpop.permute.xlu0 %282 }
  0xa8   : > { %v309_v47 = vsel %vm308_vm8, %v305_v46, %v283_v40 }
  0xa9   : > { %323 = vrot.lane.b32.xlu2 %v315_v37, %s477_s17 }
  0xab   : > { %v294_v43 = vpop.permute.xlu1 %293 }
  0xac   : > { %v314_v44 = vsel %vm312_vm9, %v310_v42, %v294_v43 }
  0xad   : > { %336 = vrot.lane.b32.xlu1 %v314_v44, %s473_s13  ;;  %v365_v60 = vmul.f32 0.375, %v314_v44 }
  0xaf   : > { %v292_v48 = vpop.permute.xlu0 %291 }
  0xb0   : > { %v313_v49 = vsel %vm312_vm9, %v309_v47, %v292_v48 }
  0xb1   : > { %334 = vrot.lane.b32.xlu0 %v313_v49, %s473_s13  ;;  %v364_v61 = vmul.f32 0.375, %v313_v49 }
  0xb5   : > { %321 = vrot.lane.b32.xlu1 %v314_v44, %s477_s17 }
  0xb9   : > { %319 = vrot.lane.b32.xlu0 %v313_v49, %s477_s17 }
  0xfb   : > { %v339_v50 = vpop.permute.xlu2 %338 }
  0xfc   : > { %v345_v51 = vadd.f32 %v339_v50, %v315_v37 }
  0xfe   : > { %v348_v52 = vmul.f32 0.25, %v345_v51 }
 0x100   : > { %356 = vrot.lane.b32.xlu2 %v348_v52, %s478_s18 }
 0x103   : > { %v324_v62 = vpop.permute.xlu2 %323 }
 0x104   : > { %v330_v0 = vadd.f32 %v324_v62, %v315_v37 }
 0x106   : > { %v333_v1 = vmul.f32 0.0625, %v330_v0 }
 0x108   : > { %374 = vrot.lane.b32.xlu2 %v366_v53, %s473_s13 }
 0x11f   : > { %v337_v54 = vpop.permute.xlu1 %336 }
 0x120   : > { %v344_v55 = vadd.f32 %v337_v54, %v314_v44 }
 0x122   : > { %v347_v56 = vmul.f32 0.25, %v344_v55 }
 0x123   : > { %v335_v57 = vpop.permute.xlu0 %334 }
 0x124   : > { %v343_v58 = vadd.f32 %v335_v57, %v313_v49  ;;  %354 = vrot.lane.b32.xlu1 %v347_v56, %s478_s18 }
 0x126   : > { %v346_v59 = vmul.f32 0.25, %v343_v58 }
 0x127   : > { %v322_v5 = vpop.permute.xlu1 %321 }
 0x128   : > { %352 = vrot.lane.b32.xlu0 %v346_v59, %s478_s18  ;;  %v329_v8 = vadd.f32 %v322_v5, %v314_v44 }
 0x12a   : > { %v332_v11 = vmul.f32 0.0625, %v329_v8 }
 0x12b   : > { %v320_v6 = vpop.permute.xlu0 %319 }
 0x12c   : > { %372 = vrot.lane.b32.xlu1 %v365_v60, %s473_s13  ;;  %v328_v9 = vadd.f32 %v320_v6, %v313_v49 }
 0x12e   : > { %v331_v14 = vmul.f32 0.0625, %v328_v9 }
 0x130   : > { %370 = vrot.lane.b32.xlu0 %v364_v61, %s473_s13 }
 0x15a   : > { %v357_v63 = vpop.permute.xlu2 %356 }
 0x15b   : > { %v363_v3 = vadd.f32 %v357_v63, %v333_v1 }
 0x162   : > { %v375_v4 = vpop.permute.xlu2 %374 }
 0x163   : > { %v381_v2 = vadd.f32 %v375_v4, %v363_v3 }
 0x165   : > { %385 = vst.msk [vmem:[%s118_s21 + $0x10] sm:$0xff] %vm382_vm10, %v381_v2 }
 0x196   : > { %v355_v7 = vpop.permute.xlu1 %354 }
 0x197   : > { %v362_v12 = vadd.f32 %v355_v7, %v332_v11 }
 0x19a   : > { %v353_v10 = vpop.permute.xlu0 %352 }
 0x19b   : > { %v361_v16 = vadd.f32 %v353_v10, %v331_v14 }
 0x19e   : > { %v373_v13 = vpop.permute.xlu1 %372 }
 0x19f   : > { %v380_v15 = vadd.f32 %v373_v13, %v362_v12 }
 0x1a1   : > { %384 = vst.msk [vmem:[%s118_s21 + $0x8] sm:$0xff] %vm382_vm10, %v380_v15 }
 0x1a2   : > { %v371_v17 = vpop.permute.xlu0 %370 }
 0x1a3   : > { %v379_v18 = vadd.f32 %v371_v17, %v361_v16 }
 0x1a5   : > { %383 = vst.msk [vmem:[%s118_s21] sm:$0xff] %vm382_vm10, %v379_v18 }
 0x1a6 PF: > { %s11_s6 = sadd.s32 1, %s471_s6  }
 0x1a7   : > { %p8_p4 = scmp.ge.s32.totalorder %s11_s6, 4  }
 0x1a9   :  { %10 = sbr.rel (!%p8_p4) target bundleno = 1 (0x1), region = 54 }

// kernel: gauss_pyramid.5
= control target key start
LH: loop header
LB: loop body
LE: loop exit
PB: predicated region body
PF: predicated region fallthrough
CT: control target
= control target key end

     0   :  { %s442_s6 = smov 0   ;;  %s502_s0 = inlined_call_operand.vmem [shape: f32[6,4,4], index: 0, kind: input, shape index: {}]   ;;  %s503_s1 = inlined_call_operand.vmem [shape: f32[6,4,4], index: 1, kind: output, shape index: {}]  }
   0x1 LB: > { %s395_s7 = sadd.s32 4294967295, %s424_s6   ;;  %p399_p0 = scmp.ge.s32.totalorder %s424_s6, 1  ;;  %s424_s6 = sphi %s442_s6, %s11_s6  }
   0x2   : > { %p88_p1 = scmp.lt.s32.totalorder %s424_s6, 3 }
   0x4   : > { %p89_p2 = pnand %p399_p0, %p88_p1 }
   0x5   : > { %s108_s8 = smul.u32 (!%p89_p2), 3, %s395_s7  ;;  %s426_s13 = smov (!%p89_p2), 126  }
   0x6   : > { %92 = sbr.rel (%p89_p2) target bundleno = 419 (0x1a3), region = 24  ;;  %s427_s14 = smov (!%p89_p2), 2  }
   0x7   : > { %p109_p3 = scmp.lt.s32.totalorder (!%p89_p2), %s108_s8, 5  ;;  %s428_s15 = smov (!%p89_p2), 4  }
   0x8   : > { %s429_s16 = smov (!%p89_p2), 6   ;;  %s430_s17 = smov (!%p89_p2), 124  }
   0x9   : > { %s431_s18 = smov (!%p89_p2), 127  }
   0xb   : > { %s505_s8 = smov (!%p109_p3, %s108_s8), 5  ;;  %vm144_vm0 = vcmask 1040384   ;;  %vm148_vm1 = vcmask 1041408   ;;  %vm152_vm2 = vcmask 1045504   ;;  %vm156_vm3 = vcmask 1046528  }
   0xc   : > { %s400_s9 = sshll.u32 %s505_s8, 2  ;;  %vm253_vm4 = vcmask 7168   ;;  %vm257_vm5 = vcmask 15360   ;;  %vm261_vm6 = vcmask 48128   ;;  %vm265_vm7 = vcmask 56320  }
   0xd   : > { %s112_s12 = scalar_lea.vmem %s502_s0, %s400_s9  ;;  %s118_s21 = scalar_lea.vmem %s503_s1, %s400_s9  ;;  %vm335_vm8 = vcmask 27648  }
   0xe   : > { %v122_v0 = vld [vmem:[%s112_s12 + $0x8] sm:$0xf]  ;;  %v120_v1 = vld [vmem:[%s112_s12] sm:$0xf]  ;;  %v121_v2 = vld [vmem:[%s112_s12 + $0x4] sm:$0xf] }
   0xf   : > { %v128_v3 = vrot.slane %v122_v0, 2  ;;  %v134_v4 = vrot.slane %v122_v0, 6  ;;  %v140_v5 = vrot.slane %v122_v0, 4  ;;  %v126_v6 = vrot.slane %v120_v1, 2 }
  0x10   : > { %v132_v7 = vrot.slane %v120_v1, 6  ;;  %v138_v8 = vrot.slane %v120_v1, 4  ;;  %v127_v9 = vrot.slane %v121_v2, 2  ;;  %v133_v10 = vrot.slane %v121_v2, 6 }
  0x11   : > { %v147_v11 = vsel %vm144_vm0, %v128_v3, %v122_v0  ;;  %v145_v12 = vsel %vm144_vm0, %v126_v6, %v120_v1  ;;  %v139_v13 = vrot.slane %v121_v2, 4 }
  0x12   : > { %v151_v14 = vsel %vm148_vm1, %v147_v11, %v134_v4  ;;  %v149_v15 = vsel %vm148_vm1, %v145_v12, %v132_v7  ;;  %v146_v16 = vsel %vm144_vm0, %v127_v9, %v121_v2 }
  0x13   : > { %v155_v17 = vsel %vm152_vm2, %v151_v14, %v140_v5  ;;  %v153_v18 = vsel %vm152_vm2, %v149_v15, %v138_v8  ;;  %v150_v19 = vsel %vm148_vm1, %v146_v16, %v133_v10 }
  0x14   : > { %v159_v20 = vsel %vm156_vm3, %v155_v17, %v128_v3  ;;  %v157_v21 = vsel %vm156_vm3, %v153_v18, %v126_v6  ;;  %v154_v22 = vsel %vm152_vm2, %v150_v19, %v139_v13 }
  0x15   : > { %v165_v23 = vrot.slane %v159_v20, 4  ;;  %v177_v24 = vrot.slane %v159_v20, 2  ;;  %v163_v25 = vrot.slane %v157_v21, 4  ;;  %v175_v26 = vrot.slane %v157_v21, 2 }
  0x16   : > { %v158_v27 = vsel %vm156_vm3, %v154_v22, %v127_v9  ;;  %v201_v30 = vmul.f32 0.375, %v159_v20  ;;  %v199_v33 = vmul.f32 0.375, %v157_v21 }
  0x17   : > { %v171_v28 = vadd.f32 %v165_v23, %v159_v20  ;;  %v183_v29 = vadd.f32 %v177_v24, %v159_v20  ;;  %v169_v31 = vadd.f32 %v163_v25, %v157_v21  ;;  %v181_v32 = vadd.f32 %v175_v26, %v157_v21 }
  0x18   : > { %v164_v34 = vrot.slane %v158_v27, 4  ;;  %v176_v35 = vrot.slane %v158_v27, 2  ;;  %v200_v42 = vmul.f32 0.375, %v158_v27  ;;  %v207_v44 = vrot.slane %v201_v30, 2 }
  0x19   : > { %v174_v36 = vmul.f32 0.0625, %v171_v28  ;;  %v186_v37 = vmul.f32 0.25, %v183_v29  ;;  %v172_v38 = vmul.f32 0.0625, %v169_v31  ;;  %v184_v39 = vmul.f32 0.25, %v181_v32 }
  0x1a   : > { %v170_v40 = vadd.f32 %v164_v34, %v158_v27  ;;  %v182_v41 = vadd.f32 %v176_v35, %v158_v27  ;;  %v205_v46 = vrot.slane %v199_v33, 2  ;;  %v206_v52 = vrot.slane %v200_v42, 2 }
  0x1b   : > { %v192_v43 = vrot.slane %v186_v37, 1  ;;  %v190_v45 = vrot.slane %v184_v39, 1 }
  0x1c   : > { %v173_v47 = vmul.f32 0.0625, %v170_v40  ;;  %v185_v48 = vmul.f32 0.25, %v182_v41 }
  0x1d   : > { %v198_v49 = vadd.f32 %v192_v43, %v174_v36  ;;  %v196_v50 = vadd.f32 %v190_v45, %v172_v38 }
  0x1e   : > { %v191_v51 = vrot.slane %v185_v48, 1 }
  0x1f   : > { %v213_v53 = vadd.f32 %v207_v44, %v198_v49  ;;  %v211_v54 = vadd.f32 %v205_v46, %v196_v50 }
  0x20   : > { %v197_v55 = vadd.f32 %v191_v51, %v173_v47 }
  0x21   : > { %221 = vrot.lane.b32.xlu1 %v213_v53, %s426_s13  ;;  %217 = vrot.lane.b32.xlu0 %v211_v54, %s426_s13 }
  0x22   : > { %v212_v56 = vadd.f32 %v206_v52, %v197_v55 }
  0x24   : > { %228 = vrot.lane.b32.xlu2 %v212_v56, %s427_s14 }
  0x29   : > { %226 = vrot.lane.b32.xlu1 %v211_v54, %s427_s14  ;;  %219 = vrot.lane.b32.xlu0 %v212_v56, %s426_s13 }
  0x2c   : > { %230 = vrot.lane.b32.xlu2 %v213_v53, %s427_s14 }
  0x31   : > { %237 = vrot.lane.b32.xlu1 %v212_v56, %s428_s15  ;;  %235 = vrot.lane.b32.xlu0 %v211_v54, %s428_s15 }
  0x34   : > { %239 = vrot.lane.b32.xlu2 %v213_v53, %s428_s15 }
  0x39   : > { %246 = vrot.lane.b32.xlu1 %v212_v56, %s429_s16  ;;  %244 = vrot.lane.b32.xlu0 %v211_v54, %s429_s16 }
  0x3c   : > { %248 = vrot.lane.b32.xlu2 %v213_v53, %s429_s16 }
  0x7e   : > { %v229_v57 = vpop.permute.xlu2 %228 }
  0x86   : > { %v231_v58 = vpop.permute.xlu2 %230 }
  0x8e   : > { %v240_v59 = vpop.permute.xlu2 %239 }
  0x93   : > { %v222_v60 = vpop.permute.xlu1 %221  ;;  %v218_v62 = vpop.permute.xlu0 %217 }
  0x94   : > { %v256_v61 = vsel %vm253_vm4, %v222_v60, %v213_v53  ;;  %v254_v8 = vsel %vm253_vm4, %v218_v62, %v211_v54 }
  0x95   : > { %v260_v63 = vsel %vm257_vm5, %v256_v61, %v231_v58 }
  0x96   : > { %v264_v0 = vsel %vm261_vm6, %v260_v63, %v240_v59  ;;  %v249_v1 = vpop.permute.xlu2 %248 }
  0x97   : > { %v268_v2 = vsel %vm265_vm7, %v264_v0, %v249_v1 }
  0x98   : > { %291 = vrot.lane.b32.xlu2 %v268_v2, %s426_s13  ;;  %v319_v20 = vmul.f32 0.375, %v268_v2 }
  0x9b   : > { %v227_v3 = vpop.permute.xlu1 %226  ;;  %v220_v4 = vpop.permute.xlu0 %219 }
  0x9c   : > { %v255_v7 = vsel %vm253_vm4, %v220_v4, %v212_v56  ;;  %v258_v10 = vsel %vm257_vm5, %v254_v8, %v227_v3 }
  0x9d   : > { %v259_v9 = vsel %vm257_vm5, %v255_v7, %v229_v57 }
  0xa0   : > { %276 = vrot.lane.b32.xlu2 %v268_v2, %s430_s17 }
  0xa3   : > { %v238_v5 = vpop.permute.xlu1 %237  ;;  %v236_v6 = vpop.permute.xlu0 %235 }
  0xa4   : > { %v263_v11 = vsel %vm261_vm6, %v259_v9, %v238_v5  ;;  %v262_v13 = vsel %vm261_vm6, %v258_v10, %v236_v6 }
  0xab   : > { %v247_v12 = vpop.permute.xlu1 %246  ;;  %v245_v15 = vpop.permute.xlu0 %244 }
  0xac   : > { %v267_v14 = vsel %vm265_vm7, %v263_v11, %v247_v12  ;;  %v266_v16 = vsel %vm265_vm7, %v262_v13, %v245_v15 }
  0xad   : > { %289 = vrot.lane.b32.xlu1 %v267_v14, %s426_s13  ;;  %287 = vrot.lane.b32.xlu0 %v266_v16, %s426_s13  ;;  %v318_v27 = vmul.f32 0.375, %v267_v14  ;;  %v317_v28 = vmul.f32 0.375, %v266_v16 }
  0xb5   : > { %274 = vrot.lane.b32.xlu1 %v267_v14, %s430_s17  ;;  %272 = vrot.lane.b32.xlu0 %v266_v16, %s430_s17 }
  0xf2   : > { %v292_v17 = vpop.permute.xlu2 %291 }
  0xf3   : > { %v298_v18 = vadd.f32 %v292_v17, %v268_v2 }
  0xf5   : > { %v301_v19 = vmul.f32 0.25, %v298_v18 }
  0xf7   : > { %309 = vrot.lane.b32.xlu2 %v301_v19, %s431_s18 }
  0xfa   : > { %v277_v29 = vpop.permute.xlu2 %276 }
  0xfb   : > { %v283_v31 = vadd.f32 %v277_v29, %v268_v2 }
  0xfd   : > { %v286_v32 = vmul.f32 0.0625, %v283_v31 }
  0xff   : > { %327 = vrot.lane.b32.xlu2 %v319_v20, %s426_s13 }
 0x11f   : > { %v290_v21 = vpop.permute.xlu1 %289  ;;  %v288_v23 = vpop.permute.xlu0 %287 }
 0x120   : > { %v297_v22 = vadd.f32 %v290_v21, %v267_v14  ;;  %v296_v24 = vadd.f32 %v288_v23, %v266_v16 }
 0x122   : > { %v300_v25 = vmul.f32 0.25, %v297_v22  ;;  %v299_v26 = vmul.f32 0.25, %v296_v24 }
 0x124   : > { %307 = vrot.lane.b32.xlu1 %v300_v25, %s431_s18  ;;  %305 = vrot.lane.b32.xlu0 %v299_v26, %s431_s18 }
 0x127   : > { %v275_v36 = vpop.permute.xlu1 %274  ;;  %v273_v37 = vpop.permute.xlu0 %272 }
 0x128   : > { %v282_v39 = vadd.f32 %v275_v36, %v267_v14  ;;  %v281_v41 = vadd.f32 %v273_v37, %v266_v16 }
 0x12a   : > { %v285_v42 = vmul.f32 0.0625, %v282_v39  ;;  %v284_v43 = vmul.f32 0.0625, %v281_v41 }
 0x12c   : > { %325 = vrot.lane.b32.xlu1 %v318_v27, %s426_s13  ;;  %323 = vrot.lane.b32.xlu0 %v317_v28, %s426_s13 }
 0x151   : > { %v310_v30 = vpop.permute.xlu2 %309 }
 0x152   : > { %v316_v33 = vadd.f32 %v310_v30, %v286_v32 }
 0x159   : > { %v328_v34 = vpop.permute.xlu2 %327 }
 0x15a   : > { %v334_v35 = vadd.f32 %v328_v34, %v316_v33 }
 0x15c   : > { %338 = vst.msk [vmem:[%s118_s21 + $0x8] sm:$0xf] %vm335_vm8, %v334_v35 }
 0x196   : > { %v308_v38 = vpop.permute.xlu1 %307  ;;  %v306_v40 = vpop.permute.xlu0 %305 }
 0x197   : > { %v315_v44 = vadd.f32 %v308_v38, %v285_v42  ;;  %v314_v45 = vadd.f32 %v306_v40, %v284_v43 }
 0x19e   : > { %v326_v46 = vpop.permute.xlu1 %325  ;;  %v324_v48 = vpop.permute.xlu0 %323 }
 0x19f   : > { %v333_v47 = vadd.f32 %v326_v46, %v315_v44  ;;  %v332_v49 = vadd.f32 %v324_v48, %v314_v45 }
 0x1a1   : > { %337 = vst.msk [vmem:[%s118_s21 + $0x4] sm:$0xf] %vm335_vm8, %v333_v47 }
 0x1a2   : > { %336 = vst.msk [vmem:[%s118_s21] sm:$0xf] %vm335_vm8, %v332_v49 }
 0x1a3 PF: > { %s11_s6 = sadd.s32 1, %s424_s6  }
 0x1a4   : > { %p8_p4 = scmp.ge.s32.totalorder %s11_s6, 4  }
 0x1a6   :  { %10 = sbr.rel (!%p8_p4) target bundleno = 1 (0x1), region = 54 }

</bundles_post_ra>
